<compile_context>
chip_gen: v7x
topology: tpu7x:2x2x1
jax: 0.10.0
libtpu: 0.0.40
codegen_flags: <defaults>
</compile_context>

<pallas_src>
import math
import functools

import jax
import jax.numpy as jnp
from jax.experimental import pallas as pl
from jax.experimental.pallas import tpu as pltpu


# ---------- fused StyleConv kernel: mapping net + mod-conv + noise + bias + PReLU ----------
def _style_conv_kernel(scale_noise_ref,            # SMEM (1,)
                       w_ref,                      # (1, dl, 1)   latent column (this sample)
                       taps_ref,                   # (1, k2, Cin, HW)
                       noise_ref,                  # (1, 1, HW)
                       mw0_ref, mb0_ref, ma0_ref,  # (dl, dl), (dl, 1), (dl, 1)
                       mw1_ref, mb1_ref, ma1_ref,  # (dl, dl), (dl, 1), (dl, 1)
                       sw_ref, sb_ref,             # (Cin, dl), (Cin, 1)
                       cw_ref,                     # (k2, Cout, Cin) raw equalized conv weight
                       bias_ref, alpha_ref,        # (Cout, 1), (Cout, 1)
                       o_ref,                      # (1, Cout, HW)
                       *, k2, c_map, c_style, c_conv, eps):
    # ---- mapping network (column form, per sample; weights stay VMEM-resident) ----
    z = w_ref[0]                                                       # (dl, 1)
    nrm = jnp.sqrt(jnp.sum(z * z, axis=0, keepdims=True))              # (1, 1)
    z = z / jnp.maximum(nrm, 1e-12)                                    # F.normalize(dim=1)

    h = jnp.dot(mw0_ref[...], z, preferred_element_type=jnp.float32) * c_map + mb0_ref[...]
    h = jnp.where(h >= 0.0, h, ma0_ref[...] * h)                       # PReLU
    h = jnp.dot(mw1_ref[...], h, preferred_element_type=jnp.float32) * c_map + mb1_ref[...]
    h = jnp.where(h >= 0.0, h, ma1_ref[...] * h)                       # PReLU

    s = jnp.dot(sw_ref[...], h, preferred_element_type=jnp.float32) * c_style + sb_ref[...]  # (Cin, 1)

    # ---- demodulation: sigma^2[co] = c^2 * sum_ci s[ci]^2 * sum_t W[t,co,ci]^2 ----
    w3 = cw_ref[...]                                                   # (k2, Cout, Cin)
    wsq = jnp.sum(w3 * w3, axis=0)                                     # (Cout, Cin)
    sigma2 = jnp.dot(wsq, s * s, preferred_element_type=jnp.float32) * (c_conv * c_conv)
    out_scale = jax.lax.rsqrt(sigma2 + eps) * c_conv                   # (Cout, 1)

    # ---- modulated conv: accumulate k*k tap matmuls; HW (=256) stays lane-dense ----
    acc = jnp.zeros(o_ref.shape[1:], jnp.float32)                      # (Cout, HW)
    for t in range(k2):                                                # static, unrolled
        x_t = taps_ref[0, t] * s                                       # modulate input channels
        acc = acc + jnp.dot(w3[t], x_t, preferred_element_type=jnp.float32)
    y = acc * out_scale                                                # demodulate

    # ---- noise + bias + PReLU epilogue ----
    y = y + scale_noise_ref[0] * noise_ref[0]                          # (1, HW) bcast over Cout
    y = y + bias_ref[...]
    y = jnp.where(y >= 0.0, y, alpha_ref[...] * y)
    o_ref[0] = y.astype(o_ref.dtype)


# -------------------------------- wrapper: one fused StyleConv --------------------------------
def style_conv(x_nchw, w_latent, p, noise, prelu_alpha, *, k):
    B, Cin, H, W = x_nchw.shape
    Cout = p["conv_w"].shape[0]
    HW = H * W
    k2 = k * k
    pad = (k - 1) // 2
    dl = w_latent.shape[1]
    f32 = jnp.float32

    # replicate ('edge') padding + shifted-tap stack, channels-on-sublanes / pixels-on-lanes.
    # TODO(synk): at production resolutions, DMA the padded (Cin, Hp, Wp) slab and slice taps
    #             inside the kernel to avoid materializing this k^2-sized stack in HBM.
    xp = x_nchw.astype(f32)
    if pad > 0:
        xp = jnp.pad(xp, ((0, 0), (0, 0), (pad, pad), (pad, pad)), mode="edge")
    taps = jnp.stack([xp[:, :, kh:kh + H, kw:kw + W]
                      for kh in range(k) for kw in range(k)], axis=1)      # (B, k2, Cin, H, W)
    taps = taps.reshape(B, k2, Cin, HW)

    w_col = w_latent.astype(f32).reshape(B, dl, 1)
    noise3 = noise.astype(f32).reshape(B, 1, HW)
    # raw conv weight rearranged to (k2, Cout, Cin), tap index t = kh*k + kw
    w3 = jnp.transpose(p["conv_w"].astype(f32), (2, 3, 0, 1)).reshape(k2, Cout, Cin)

    mw = [w.astype(f32) for w in p["map_w"]]
    mb = [b.astype(f32).reshape(dl, 1) for b in p["map_b"]]
    ma = [a.astype(f32).reshape(dl, 1) for a in p["map_alpha"]]
    sw = p["style_w"].astype(f32)
    sb = p["style_b"].astype(f32).reshape(Cin, 1)
    bias = p["bias"].astype(f32).reshape(Cout, 1)
    alpha = prelu_alpha.astype(f32).reshape(Cout, 1)
    scale_noise = p["scale_noise"].astype(f32).reshape(1)

    kernel = functools.partial(
        _style_conv_kernel, k2=k2,
        c_map=1.0 / math.sqrt(dl), c_style=1.0 / math.sqrt(dl),
        c_conv=1.0 / math.sqrt(Cin * k * k), eps=1e-8)

    full2 = lambda b: (0, 0)
    out = pl.pallas_call(
        kernel,
        out_shape=jax.ShapeDtypeStruct((B, Cout, HW), f32),
        grid=(B,),
        in_specs=[
            pl.BlockSpec(memory_space=pltpu.MemorySpace.SMEM),             # scale_noise scalar
            pl.BlockSpec((1, dl, 1), lambda b: (b, 0, 0)),                 # latent column
            pl.BlockSpec((1, k2, Cin, HW), lambda b: (b, 0, 0, 0)),        # input taps
            pl.BlockSpec((1, 1, HW), lambda b: (b, 0, 0)),                 # per-pixel noise
            pl.BlockSpec((dl, dl), full2), pl.BlockSpec((dl, 1), full2), pl.BlockSpec((dl, 1), full2),
            pl.BlockSpec((dl, dl), full2), pl.BlockSpec((dl, 1), full2), pl.BlockSpec((dl, 1), full2),
            pl.BlockSpec((Cin, dl), full2), pl.BlockSpec((Cin, 1), full2),
            pl.BlockSpec((k2, Cout, Cin), lambda b: (0, 0, 0)),
            pl.BlockSpec((Cout, 1), full2), pl.BlockSpec((Cout, 1), full2),
        ],
        out_specs=pl.BlockSpec((1, Cout, HW), lambda b: (b, 0, 0)),
        compiler_params=pltpu.CompilerParams(dimension_semantics=("parallel",)),
    )(scale_noise, w_col, taps, noise3,
      mw[0], mb[0], ma[0], mw[1], mb[1], ma[1],
      sw, sb, w3, bias, alpha)
    return out.reshape(B, Cout, H, W)


def style_block_forward(x_nchw, w_latent, params, noises):
    x = x_nchw.astype(jnp.float32)
    for i in range(3):
        x = style_conv(x, w_latent, params["convs"][i], noises[i],
                       params["alphas"][i], k=params["ks"][i])
    return x


# ----------------------------------- parameter init -----------------------------------
def init_params(key, d_latent, last_planes, in_planes, out_planes, dense_depth, kernel_size):
    def normal(k, shape):
        return jax.random.normal(k, shape, dtype=jnp.float32)

    def init_style_conv(k, cin, cout, ksz):
        ks = jax.random.split(k, 7)
        return {
            "map_w": [normal(ks[0], (d_latent, d_latent)),
                      normal(ks[1], (d_latent, d_latent))],
            "map_b": [jnp.zeros((d_latent,), jnp.float32),      # EqualizedLinear bias scale 0.0
                      jnp.zeros((d_latent,), jnp.float32)],
            "map_alpha": [jnp.full((d_latent,), 0.25, jnp.float32),   # nn.PReLU default init
                          jnp.full((d_latent,), 0.25, jnp.float32)],
            "style_w": normal(ks[2], (cin, d_latent)),
            "style_b": normal(ks[3], (cin,)) * 1.0,             # bias scale 1.0 (normal * 1.0 per spec)
            "conv_w": normal(ks[4], (cout, cin, ksz, ksz)),
            "scale_noise": normal(ks[5], (1,)),
            "bias": normal(ks[6], (cout,)),
        }

    k1, k2, k3 = jax.random.split(key, 3)
    convs = [
        init_style_conv(k1, last_planes, in_planes, 1),
        init_style_conv(k2, in_planes, in_planes, kernel_size),
        init_style_conv(k3, in_planes, out_planes + dense_depth, kernel_size),
    ]
    alphas = [
        jnp.full((in_planes,), 0.25, jnp.float32),
        jnp.full((in_planes,), 0.25, jnp.float32),
        jnp.full((out_planes + dense_depth,), 0.25, jnp.float32),
    ]
    return {"convs": convs, "alphas": alphas, "ks": [1, kernel_size, kernel_size]}


# --------------------------- pure-JAX reference (correctness check) ---------------------------
def _ref_forward(x_nchw, w_latent, params, noises):
    x = x_nchw.astype(jnp.float32)
    dl = w_latent.shape[1]
    c_lin = 1.0 / math.sqrt(dl)
    for i in range(3):
        p = params["convs"][i]
        k = params["ks"][i]
        B, Cin, H, W = x.shape
        Cout = p["conv_w"].shape[0]
        c_conv = 1.0 / math.sqrt(Cin * k * k)

        z = w_latent.astype(jnp.float32)
        z = z / jnp.maximum(jnp.linalg.norm(z, axis=1, keepdims=True), 1e-12)
        for j in range(2):
            z = z @ (p["map_w"][j] * c_lin).T + p["map_b"][j]
            z = jnp.where(z >= 0.0, z, p["map_alpha"][j] * z)
        s = z @ (p["style_w"] * c_lin).T + p["style_b"]                        # (B, Cin)

        wts = p["conv_w"][None] * c_conv * s[:, None, :, None, None]           # (B,Cout,Cin,k,k)
        sigma_inv = jax.lax.rsqrt(jnp.sum(wts ** 2, axis=(2, 3, 4), keepdims=True) + 1e-8)
        wts = wts * sigma_inv
        pad = (k - 1) // 2
        xpad = jnp.pad(x, ((0, 0), (0, 0), (pad, pad), (pad, pad)), mode="edge")
        ys = [jax.lax.conv_general_dilated(
                  xpad[b:b + 1], wts[b], (1, 1), "VALID",
                  dimension_numbers=("NCHW", "OIHW", "NCHW")) for b in range(B)]
        y = jnp.concatenate(ys, axis=0)

        y = y + p["scale_noise"].reshape(1, 1, 1, 1) * noises[i]
        y = y + p["bias"].reshape(1, Cout, 1, 1)
        a = params["alphas"][i].reshape(1, Cout, 1, 1)
        x = jnp.where(y >= 0.0, y, a * y)
    return x


if __name__ == "__main__":
    d_latent, last_planes, in_planes = 32, 4, 8
    out_planes, dense_depth, kernel_size = 8, 4, 3
    B, H, W = 2, 16, 16

    key = jax.random.PRNGKey(0)
    kp, kx, kw, kn = jax.random.split(key, 4)

    params = init_params(kp, d_latent, last_planes, in_planes,
                         out_planes, dense_depth, kernel_size)
    x = jax.random.normal(kx, (B, last_planes, H, W), dtype=jnp.float32)
    w = jax.random.normal(kw, (B, d_latent), dtype=jnp.float32)

    nkeys = jax.random.split(kn, 3)
    noises = [jax.random.normal(nkeys[i], (B, 1, H, W), dtype=jnp.float32) for i in range(3)]

    fwd = jax.jit(lambda xx, ww: style_block_forward(xx, ww, params, noises))
    y = jax.block_until_ready(fwd(x, w))

    assert y.shape == (B, out_planes + dense_depth, H, W), y.shape
    assert bool(jnp.all(jnp.isfinite(y)))

    y_ref = _ref_forward(x, w, params, noises)
    err = float(jnp.max(jnp.abs(y - y_ref)))
    assert err < 2e-3, f"mismatch vs pure-JAX reference: max abs err {err}"

    print("KERNEL_OK")
</pallas_src>

<mosaic_0001>
module attributes {stable_mosaic.version = 11 : i64} {
  func.func @_style_conv_kernel(%arg0: i32, %arg1: memref<1xf32, #tpu.memory_space<smem>>, %arg2: memref<1x32x1xf32, #tpu.memory_space<vmem>>, %arg3: memref<1x1x4x256xf32, #tpu.memory_space<vmem>>, %arg4: memref<1x1x256xf32, #tpu.memory_space<vmem>>, %arg5: memref<32x32xf32, #tpu.memory_space<vmem>>, %arg6: memref<32x1xf32, #tpu.memory_space<vmem>>, %arg7: memref<32x1xf32, #tpu.memory_space<vmem>>, %arg8: memref<32x32xf32, #tpu.memory_space<vmem>>, %arg9: memref<32x1xf32, #tpu.memory_space<vmem>>, %arg10: memref<32x1xf32, #tpu.memory_space<vmem>>, %arg11: memref<4x32xf32, #tpu.memory_space<vmem>>, %arg12: memref<4x1xf32, #tpu.memory_space<vmem>>, %arg13: memref<1x8x4xf32, #tpu.memory_space<vmem>>, %arg14: memref<8x1xf32, #tpu.memory_space<vmem>>, %arg15: memref<8x1xf32, #tpu.memory_space<vmem>>, %arg16: memref<1x8x256xf32, #tpu.memory_space<vmem>>) attributes {dimension_semantics = [#tpu.dimension_semantics<parallel>], iteration_bounds = array<i64: 2>, scalar_prefetch = 0 : i64, scratch_operands = 0 : i64, tpu.core_type = #tpu.core_type<tc>, window_params = [{transform_indices = @transform_0, window_bounds = array<i64: 1>}, {transform_indices = @transform_1, window_bounds = array<i64: 1, 32, 1>}, {transform_indices = @transform_2, window_bounds = array<i64: 1, 1, 4, 256>}, {transform_indices = @transform_3, window_bounds = array<i64: 1, 1, 256>}, {pipeline_mode = #tpu.pipeline_mode<synchronous>, transform_indices = @transform_4, window_bounds = array<i64: 32, 32>}, {pipeline_mode = #tpu.pipeline_mode<synchronous>, transform_indices = @transform_5, window_bounds = array<i64: 32, 1>}, {pipeline_mode = #tpu.pipeline_mode<synchronous>, transform_indices = @transform_6, window_bounds = array<i64: 32, 1>}, {pipeline_mode = #tpu.pipeline_mode<synchronous>, transform_indices = @transform_7, window_bounds = array<i64: 32, 32>}, {pipeline_mode = #tpu.pipeline_mode<synchronous>, transform_indices = @transform_8, window_bounds = array<i64: 32, 1>}, {pipeline_mode = #tpu.pipeline_mode<synchronous>, transform_indices = @transform_9, window_bounds = array<i64: 32, 1>}, {pipeline_mode = #tpu.pipeline_mode<synchronous>, transform_indices = @transform_10, window_bounds = array<i64: 4, 32>}, {pipeline_mode = #tpu.pipeline_mode<synchronous>, transform_indices = @transform_11, window_bounds = array<i64: 4, 1>}, {pipeline_mode = #tpu.pipeline_mode<synchronous>, transform_indices = @transform_12, window_bounds = array<i64: 1, 8, 4>}, {pipeline_mode = #tpu.pipeline_mode<synchronous>, transform_indices = @transform_13, window_bounds = array<i64: 8, 1>}, {pipeline_mode = #tpu.pipeline_mode<synchronous>, transform_indices = @transform_14, window_bounds = array<i64: 8, 1>}, {transform_indices = @transform_15, window_bounds = array<i64: 1, 8, 256>}]} {
    %c0 = arith.constant 0 : index
    %c0_0 = arith.constant 0 : index
    %c0_1 = arith.constant 0 : index
    %0 = vector.load %arg2[%c0, %c0_0, %c0_1] : memref<1x32x1xf32, #tpu.memory_space<vmem>>, vector<1x32x1xf32>
    %1 = vector.shape_cast %0 : vector<1x32x1xf32> to vector<32x1xf32>
    %2 = arith.mulf %1, %1 : vector<32x1xf32>
    %cst = arith.constant dense<0.000000e+00> : vector<1xf32>
    %3 = vector.multi_reduction <add>, %2, %cst [0] : vector<32x1xf32> to vector<1xf32>
    %4 = vector.shape_cast %3 : vector<1xf32> to vector<1x1xf32>
    %5 = math.sqrt %4 : vector<1x1xf32>
    %cst_2 = arith.constant 9.99999996E-13 : f32
    %6 = vector.broadcast %cst_2 : f32 to vector<1x1xf32>
    %7 = arith.maximumf %5, %6 : vector<1x1xf32>
    %8 = vector.broadcast %7 : vector<1x1xf32> to vector<32x1xf32>
    %9 = arith.divf %1, %8 : vector<32x1xf32>
    %c0_3 = arith.constant 0 : index
    %c0_4 = arith.constant 0 : index
    %10 = vector.load %arg5[%c0_3, %c0_4] : memref<32x32xf32, #tpu.memory_space<vmem>>, vector<32x32xf32>
    %cst_5 = arith.constant dense<0.000000e+00> : vector<32x1xf32>
    %11 = tpu.matmul %10, %9, %cst_5 {dimension_numbers = #tpu.dot_dimension_numbers<[1], [0], [0], [1], [0, 0, 1, 1], [], []>} : vector<32x32xf32>, vector<32x1xf32>, vector<32x1xf32> -> vector<32x1xf32>
    %cst_6 = arith.constant 0.176776692 : f32
    %12 = vector.broadcast %cst_6 : f32 to vector<32x1xf32>
    %13 = arith.mulf %11, %12 : vector<32x1xf32>
    %c0_7 = arith.constant 0 : index
    %c0_8 = arith.constant 0 : index
    %14 = vector.load %arg6[%c0_7, %c0_8] : memref<32x1xf32, #tpu.memory_space<vmem>>, vector<32x1xf32>
    %15 = arith.addf %13, %14 : vector<32x1xf32>
    %cst_9 = arith.constant 0.000000e+00 : f32
    %16 = vector.broadcast %cst_9 : f32 to vector<32x1xf32>
    %17 = arith.cmpf oge, %15, %16 : vector<32x1xf32>
    %c0_10 = arith.constant 0 : index
    %c0_11 = arith.constant 0 : index
    %18 = vector.load %arg7[%c0_10, %c0_11] : memref<32x1xf32, #tpu.memory_space<vmem>>, vector<32x1xf32>
    %19 = arith.mulf %18, %15 : vector<32x1xf32>
    %20 = arith.select %17, %15, %19 : vector<32x1xi1>, vector<32x1xf32>
    %c0_12 = arith.constant 0 : index
    %c0_13 = arith.constant 0 : index
    %21 = vector.load %arg8[%c0_12, %c0_13] : memref<32x32xf32, #tpu.memory_space<vmem>>, vector<32x32xf32>
    %cst_14 = arith.constant dense<0.000000e+00> : vector<32x1xf32>
    %22 = tpu.matmul %21, %20, %cst_14 {dimension_numbers = #tpu.dot_dimension_numbers<[1], [0], [0], [1], [0, 0, 1, 1], [], []>} : vector<32x32xf32>, vector<32x1xf32>, vector<32x1xf32> -> vector<32x1xf32>
    %cst_15 = arith.constant 0.176776692 : f32
    %23 = vector.broadcast %cst_15 : f32 to vector<32x1xf32>
    %24 = arith.mulf %22, %23 : vector<32x1xf32>
    %c0_16 = arith.constant 0 : index
    %c0_17 = arith.constant 0 : index
    %25 = vector.load %arg9[%c0_16, %c0_17] : memref<32x1xf32, #tpu.memory_space<vmem>>, vector<32x1xf32>
    %26 = arith.addf %24, %25 : vector<32x1xf32>
    %cst_18 = arith.constant 0.000000e+00 : f32
    %27 = vector.broadcast %cst_18 : f32 to vector<32x1xf32>
    %28 = arith.cmpf oge, %26, %27 : vector<32x1xf32>
    %c0_19 = arith.constant 0 : index
    %c0_20 = arith.constant 0 : index
    %29 = vector.load %arg10[%c0_19, %c0_20] : memref<32x1xf32, #tpu.memory_space<vmem>>, vector<32x1xf32>
    %30 = arith.mulf %29, %26 : vector<32x1xf32>
    %31 = arith.select %28, %26, %30 : vector<32x1xi1>, vector<32x1xf32>
    %c0_21 = arith.constant 0 : index
    %c0_22 = arith.constant 0 : index
    %32 = vector.load %arg11[%c0_21, %c0_22] : memref<4x32xf32, #tpu.memory_space<vmem>>, vector<4x32xf32>
    %cst_23 = arith.constant dense<0.000000e+00> : vector<4x1xf32>
    %33 = tpu.matmul %32, %31, %cst_23 {dimension_numbers = #tpu.dot_dimension_numbers<[1], [0], [0], [1], [0, 0, 1, 1], [], []>} : vector<4x32xf32>, vector<32x1xf32>, vector<4x1xf32> -> vector<4x1xf32>
    %cst_24 = arith.constant 0.176776692 : f32
    %34 = vector.broadcast %cst_24 : f32 to vector<4x1xf32>
    %35 = arith.mulf %33, %34 : vector<4x1xf32>
    %c0_25 = arith.constant 0 : index
    %c0_26 = arith.constant 0 : index
    %36 = vector.load %arg12[%c0_25, %c0_26] : memref<4x1xf32, #tpu.memory_space<vmem>>, vector<4x1xf32>
    %37 = arith.addf %35, %36 : vector<4x1xf32>
    %c0_27 = arith.constant 0 : index
    %c0_28 = arith.constant 0 : index
    %c0_29 = arith.constant 0 : index
    %38 = vector.load %arg13[%c0_27, %c0_28, %c0_29] : memref<1x8x4xf32, #tpu.memory_space<vmem>>, vector<1x8x4xf32>
    %39 = arith.mulf %38, %38 : vector<1x8x4xf32>
    %cst_30 = arith.constant dense<0.000000e+00> : vector<8x4xf32>
    %40 = vector.multi_reduction <add>, %39, %cst_30 [0] : vector<1x8x4xf32> to vector<8x4xf32>
    %41 = arith.mulf %37, %37 : vector<4x1xf32>
    %cst_31 = arith.constant dense<0.000000e+00> : vector<8x1xf32>
    %42 = tpu.matmul %40, %41, %cst_31 {dimension_numbers = #tpu.dot_dimension_numbers<[1], [0], [0], [1], [0, 0, 1, 1], [], []>} : vector<8x4xf32>, vector<4x1xf32>, vector<8x1xf32> -> vector<8x1xf32>
    %cst_32 = arith.constant 2.500000e-01 : f32
    %43 = vector.broadcast %cst_32 : f32 to vector<8x1xf32>
    %44 = arith.mulf %42, %43 : vector<8x1xf32>
    %cst_33 = arith.constant 9.99999993E-9 : f32
    %45 = vector.broadcast %cst_33 : f32 to vector<8x1xf32>
    %46 = arith.addf %44, %45 : vector<8x1xf32>
    %47 = math.rsqrt %46 : vector<8x1xf32>
    %cst_34 = arith.constant 5.000000e-01 : f32
    %48 = vector.broadcast %cst_34 : f32 to vector<8x1xf32>
    %49 = arith.mulf %47, %48 : vector<8x1xf32>
    %cst_35 = arith.constant 0.000000e+00 : f32
    %50 = vector.broadcast %cst_35 : f32 to vector<8x256xf32>
    %c0_36 = arith.constant 0 : index
    %c0_37 = arith.constant 0 : index
    %c0_38 = arith.constant 0 : index
    %c0_39 = arith.constant 0 : index
    %51 = vector.load %arg3[%c0_36, %c0_37, %c0_38, %c0_39] : memref<1x1x4x256xf32, #tpu.memory_space<vmem>>, vector<1x1x4x256xf32>
    %52 = vector.shape_cast %51 : vector<1x1x4x256xf32> to vector<4x256xf32>
    %53 = vector.broadcast %37 : vector<4x1xf32> to vector<4x256xf32>
    %54 = arith.mulf %52, %53 : vector<4x256xf32>
    %55 = vector.shape_cast %38 : vector<1x8x4xf32> to vector<8x4xf32>
    %cst_40 = arith.constant dense<0.000000e+00> : vector<8x256xf32>
    %56 = tpu.matmul %55, %54, %cst_40 {dimension_numbers = #tpu.dot_dimension_numbers<[1], [0], [0], [1], [0, 0, 1, 1], [], []>} : vector<8x4xf32>, vector<4x256xf32>, vector<8x256xf32> -> vector<8x256xf32>
    %57 = arith.addf %50, %56 : vector<8x256xf32>
    %58 = vector.broadcast %49 : vector<8x1xf32> to vector<8x256xf32>
    %59 = arith.mulf %57, %58 : vector<8x256xf32>
    %c0_41 = arith.constant 0 : index
    %60 = memref.load %arg1[%c0_41] : memref<1xf32, #tpu.memory_space<smem>>
    %c0_42 = arith.constant 0 : index
    %c0_43 = arith.constant 0 : index
    %c0_44 = arith.constant 0 : index
    %61 = vector.load %arg4[%c0_42, %c0_43, %c0_44] : memref<1x1x256xf32, #tpu.memory_space<vmem>>, vector<1x1x256xf32>
    %62 = vector.shape_cast %61 : vector<1x1x256xf32> to vector<1x256xf32>
    %63 = vector.broadcast %60 : f32 to vector<1x256xf32>
    %64 = arith.mulf %63, %62 : vector<1x256xf32>
    %65 = vector.broadcast %64 : vector<1x256xf32> to vector<8x256xf32>
    %66 = arith.addf %59, %65 : vector<8x256xf32>
    %c0_45 = arith.constant 0 : index
    %c0_46 = arith.constant 0 : index
    %67 = vector.load %arg14[%c0_45, %c0_46] : memref<8x1xf32, #tpu.memory_space<vmem>>, vector<8x1xf32>
    %68 = vector.broadcast %67 : vector<8x1xf32> to vector<8x256xf32>
    %69 = arith.addf %66, %68 : vector<8x256xf32>
    %cst_47 = arith.constant 0.000000e+00 : f32
    %70 = vector.broadcast %cst_47 : f32 to vector<8x256xf32>
    %71 = arith.cmpf oge, %69, %70 : vector<8x256xf32>
    %c0_48 = arith.constant 0 : index
    %c0_49 = arith.constant 0 : index
    %72 = vector.load %arg15[%c0_48, %c0_49] : memref<8x1xf32, #tpu.memory_space<vmem>>, vector<8x1xf32>
    %73 = vector.broadcast %72 : vector<8x1xf32> to vector<8x256xf32>
    %74 = arith.mulf %73, %69 : vector<8x256xf32>
    %75 = arith.select %71, %69, %74 : vector<8x256xi1>, vector<8x256xf32>
    %c0_50 = arith.constant 0 : index
    %c0_51 = arith.constant 0 : index
    %c0_52 = arith.constant 0 : index
    %76 = vector.load %arg16[%c0_50, %c0_51, %c0_52] : memref<1x8x256xf32, #tpu.memory_space<vmem>>, vector<1x8x256xf32>
    %77 = vector.shape_cast %76 : vector<1x8x256xf32> to vector<8x256xf32>
    %78 = vector.shape_cast %75 : vector<8x256xf32> to vector<1x8x256xf32>
    tpu.vector_store %arg16[%c0_50, %c0_51, %c0_52], %78 {strides = array<i32>} : memref<1x8x256xf32, #tpu.memory_space<vmem>>, vector<1x8x256xf32>,
    return
  }
  func.func @transform_0(%arg0: i32) -> i32 {
    %c0_i32 = arith.constant 0 : i32
    %c0_i32_0 = arith.constant 0 : i32
    return %c0_i32 : i32
  }
  func.func @transform_1(%arg0: i32) -> (i32, i32, i32) {
    %c0_i32 = arith.constant 0 : i32
    %c0_i32_0 = arith.constant 0 : i32
    %c0_i32_1 = arith.constant 0 : i32
    return %arg0, %c0_i32, %c0_i32_0 : i32, i32, i32
  }
  func.func @transform_2(%arg0: i32) -> (i32, i32, i32, i32) {
    %c0_i32 = arith.constant 0 : i32
    %c0_i32_0 = arith.constant 0 : i32
    %c0_i32_1 = arith.constant 0 : i32
    %c0_i32_2 = arith.constant 0 : i32
    return %arg0, %c0_i32, %c0_i32_0, %c0_i32_1 : i32, i32, i32, i32
  }
  func.func @transform_3(%arg0: i32) -> (i32, i32, i32) {
    %c0_i32 = arith.constant 0 : i32
    %c0_i32_0 = arith.constant 0 : i32
    %c0_i32_1 = arith.constant 0 : i32
    return %arg0, %c0_i32, %c0_i32_0 : i32, i32, i32
  }
  func.func @transform_4(%arg0: i32) -> (i32, i32) {
    %c0_i32 = arith.constant 0 : i32
    %c0_i32_0 = arith.constant 0 : i32
    %c0_i32_1 = arith.constant 0 : i32
    return %c0_i32, %c0_i32_0 : i32, i32
  }
  func.func @transform_5(%arg0: i32) -> (i32, i32) {
    %c0_i32 = arith.constant 0 : i32
    %c0_i32_0 = arith.constant 0 : i32
    %c0_i32_1 = arith.constant 0 : i32
    return %c0_i32, %c0_i32_0 : i32, i32
  }
  func.func @transform_6(%arg0: i32) -> (i32, i32) {
    %c0_i32 = arith.constant 0 : i32
    %c0_i32_0 = arith.constant 0 : i32
    %c0_i32_1 = arith.constant 0 : i32
    return %c0_i32, %c0_i32_0 : i32, i32
  }
  func.func @transform_7(%arg0: i32) -> (i32, i32) {
    %c0_i32 = arith.constant 0 : i32
    %c0_i32_0 = arith.constant 0 : i32
    %c0_i32_1 = arith.constant 0 : i32
    return %c0_i32, %c0_i32_0 : i32, i32
  }
  func.func @transform_8(%arg0: i32) -> (i32, i32) {
    %c0_i32 = arith.constant 0 : i32
    %c0_i32_0 = arith.constant 0 : i32
    %c0_i32_1 = arith.constant 0 : i32
    return %c0_i32, %c0_i32_0 : i32, i32
  }
  func.func @transform_9(%arg0: i32) -> (i32, i32) {
    %c0_i32 = arith.constant 0 : i32
    %c0_i32_0 = arith.constant 0 : i32
    %c0_i32_1 = arith.constant 0 : i32
    return %c0_i32, %c0_i32_0 : i32, i32
  }
  func.func @transform_10(%arg0: i32) -> (i32, i32) {
    %c0_i32 = arith.constant 0 : i32
    %c0_i32_0 = arith.constant 0 : i32
    %c0_i32_1 = arith.constant 0 : i32
    return %c0_i32, %c0_i32_0 : i32, i32
  }
  func.func @transform_11(%arg0: i32) -> (i32, i32) {
    %c0_i32 = arith.constant 0 : i32
    %c0_i32_0 = arith.constant 0 : i32
    %c0_i32_1 = arith.constant 0 : i32
    return %c0_i32, %c0_i32_0 : i32, i32
  }
  func.func @transform_12(%arg0: i32) -> (i32, i32, i32) {
    %c0_i32 = arith.constant 0 : i32
    %c0_i32_0 = arith.constant 0 : i32
    %c0_i32_1 = arith.constant 0 : i32
    %c0_i32_2 = arith.constant 0 : i32
    return %c0_i32, %c0_i32_0, %c0_i32_1 : i32, i32, i32
  }
  func.func @transform_13(%arg0: i32) -> (i32, i32) {
    %c0_i32 = arith.constant 0 : i32
    %c0_i32_0 = arith.constant 0 : i32
    %c0_i32_1 = arith.constant 0 : i32
    return %c0_i32, %c0_i32_0 : i32, i32
  }
  func.func @transform_14(%arg0: i32) -> (i32, i32) {
    %c0_i32 = arith.constant 0 : i32
    %c0_i32_0 = arith.constant 0 : i32
    %c0_i32_1 = arith.constant 0 : i32
    return %c0_i32, %c0_i32_0 : i32, i32
  }
  func.func @transform_15(%arg0: i32) -> (i32, i32, i32) {
    %c0_i32 = arith.constant 0 : i32
    %c0_i32_0 = arith.constant 0 : i32
    %c0_i32_1 = arith.constant 0 : i32
    return %arg0, %c0_i32, %c0_i32_0 : i32, i32, i32
  }
}

module attributes {stable_mosaic.version = 11 : i64} {
  func.func @_style_conv_kernel(%arg0: i32, %arg1: memref<1xf32, #tpu.memory_space<smem>>, %arg2: memref<1x32x1xf32, #tpu.memory_space<vmem>>, %arg3: memref<1x9x8x256xf32, #tpu.memory_space<vmem>>, %arg4: memref<1x1x256xf32, #tpu.memory_space<vmem>>, %arg5: memref<32x32xf32, #tpu.memory_space<vmem>>, %arg6: memref<32x1xf32, #tpu.memory_space<vmem>>, %arg7: memref<32x1xf32, #tpu.memory_space<vmem>>, %arg8: memref<32x32xf32, #tpu.memory_space<vmem>>, %arg9: memref<32x1xf32, #tpu.memory_space<vmem>>, %arg10: memref<32x1xf32, #tpu.memory_space<vmem>>, %arg11: memref<8x32xf32, #tpu.memory_space<vmem>>, %arg12: memref<8x1xf32, #tpu.memory_space<vmem>>, %arg13: memref<9x8x8xf32, #tpu.memory_space<vmem>>, %arg14: memref<8x1xf32, #tpu.memory_space<vmem>>, %arg15: memref<8x1xf32, #tpu.memory_space<vmem>>, %arg16: memref<1x8x256xf32, #tpu.memory_space<vmem>>) attributes {dimension_semantics = [#tpu.dimension_semantics<parallel>], iteration_bounds = array<i64: 2>, scalar_prefetch = 0 : i64, scratch_operands = 0 : i64, tpu.core_type = #tpu.core_type<tc>, window_params = [{transform_indices = @transform_0, window_bounds = array<i64: 1>}, {transform_indices = @transform_1, window_bounds = array<i64: 1, 32, 1>}, {transform_indices = @transform_2, window_bounds = array<i64: 1, 9, 8, 256>}, {transform_indices = @transform_3, window_bounds = array<i64: 1, 1, 256>}, {pipeline_mode = #tpu.pipeline_mode<synchronous>, transform_indices = @transform_4, window_bounds = array<i64: 32, 32>}, {pipeline_mode = #tpu.pipeline_mode<synchronous>, transform_indices = @transform_5, window_bounds = array<i64: 32, 1>}, {pipeline_mode = #tpu.pipeline_mode<synchronous>, transform_indices = @transform_6, window_bounds = array<i64: 32, 1>}, {pipeline_mode = #tpu.pipeline_mode<synchronous>, transform_indices = @transform_7, window_bounds = array<i64: 32, 32>}, {pipeline_mode = #tpu.pipeline_mode<synchronous>, transform_indices = @transform_8, window_bounds = array<i64: 32, 1>}, {pipeline_mode = #tpu.pipeline_mode<synchronous>, transform_indices = @transform_9, window_bounds = array<i64: 32, 1>}, {pipeline_mode = #tpu.pipeline_mode<synchronous>, transform_indices = @transform_10, window_bounds = array<i64: 8, 32>}, {pipeline_mode = #tpu.pipeline_mode<synchronous>, transform_indices = @transform_11, window_bounds = array<i64: 8, 1>}, {pipeline_mode = #tpu.pipeline_mode<synchronous>, transform_indices = @transform_12, window_bounds = array<i64: 9, 8, 8>}, {pipeline_mode = #tpu.pipeline_mode<synchronous>, transform_indices = @transform_13, window_bounds = array<i64: 8, 1>}, {pipeline_mode = #tpu.pipeline_mode<synchronous>, transform_indices = @transform_14, window_bounds = array<i64: 8, 1>}, {transform_indices = @transform_15, window_bounds = array<i64: 1, 8, 256>}]} {
    %c0 = arith.constant 0 : index
    %c0_0 = arith.constant 0 : index
    %c0_1 = arith.constant 0 : index
    %0 = vector.load %arg2[%c0, %c0_0, %c0_1] : memref<1x32x1xf32, #tpu.memory_space<vmem>>, vector<1x32x1xf32>
    %1 = vector.shape_cast %0 : vector<1x32x1xf32> to vector<32x1xf32>
    %2 = arith.mulf %1, %1 : vector<32x1xf32>
    %cst = arith.constant dense<0.000000e+00> : vector<1xf32>
    %3 = vector.multi_reduction <add>, %2, %cst [0] : vector<32x1xf32> to vector<1xf32>
    %4 = vector.shape_cast %3 : vector<1xf32> to vector<1x1xf32>
    %5 = math.sqrt %4 : vector<1x1xf32>
    %cst_2 = arith.constant 9.99999996E-13 : f32
    %6 = vector.broadcast %cst_2 : f32 to vector<1x1xf32>
    %7 = arith.maximumf %5, %6 : vector<1x1xf32>
    %8 = vector.broadcast %7 : vector<1x1xf32> to vector<32x1xf32>
    %9 = arith.divf %1, %8 : vector<32x1xf32>
    %c0_3 = arith.constant 0 : index
    %c0_4 = arith.constant 0 : index
    %10 = vector.load %arg5[%c0_3, %c0_4] : memref<32x32xf32, #tpu.memory_space<vmem>>, vector<32x32xf32>
    %cst_5 = arith.constant dense<0.000000e+00> : vector<32x1xf32>
    %11 = tpu.matmul %10, %9, %cst_5 {dimension_numbers = #tpu.dot_dimension_numbers<[1], [0], [0], [1], [0, 0, 1, 1], [], []>} : vector<32x32xf32>, vector<32x1xf32>, vector<32x1xf32> -> vector<32x1xf32>
    %cst_6 = arith.constant 0.176776692 : f32
    %12 = vector.broadcast %cst_6 : f32 to vector<32x1xf32>
    %13 = arith.mulf %11, %12 : vector<32x1xf32>
    %c0_7 = arith.constant 0 : index
    %c0_8 = arith.constant 0 : index
    %14 = vector.load %arg6[%c0_7, %c0_8] : memref<32x1xf32, #tpu.memory_space<vmem>>, vector<32x1xf32>
    %15 = arith.addf %13, %14 : vector<32x1xf32>
    %cst_9 = arith.constant 0.000000e+00 : f32
    %16 = vector.broadcast %cst_9 : f32 to vector<32x1xf32>
    %17 = arith.cmpf oge, %15, %16 : vector<32x1xf32>
    %c0_10 = arith.constant 0 : index
    %c0_11 = arith.constant 0 : index
    %18 = vector.load %arg7[%c0_10, %c0_11] : memref<32x1xf32, #tpu.memory_space<vmem>>, vector<32x1xf32>
    %19 = arith.mulf %18, %15 : vector<32x1xf32>
    %20 = arith.select %17, %15, %19 : vector<32x1xi1>, vector<32x1xf32>
    %c0_12 = arith.constant 0 : index
    %c0_13 = arith.constant 0 : index
    %21 = vector.load %arg8[%c0_12, %c0_13] : memref<32x32xf32, #tpu.memory_space<vmem>>, vector<32x32xf32>
    %cst_14 = arith.constant dense<0.000000e+00> : vector<32x1xf32>
    %22 = tpu.matmul %21, %20, %cst_14 {dimension_numbers = #tpu.dot_dimension_numbers<[1], [0], [0], [1], [0, 0, 1, 1], [], []>} : vector<32x32xf32>, vector<32x1xf32>, vector<32x1xf32> -> vector<32x1xf32>
    %cst_15 = arith.constant 0.176776692 : f32
    %23 = vector.broadcast %cst_15 : f32 to vector<32x1xf32>
    %24 = arith.mulf %22, %23 : vector<32x1xf32>
    %c0_16 = arith.constant 0 : index
    %c0_17 = arith.constant 0 : index
    %25 = vector.load %arg9[%c0_16, %c0_17] : memref<32x1xf32, #tpu.memory_space<vmem>>, vector<32x1xf32>
    %26 = arith.addf %24, %25 : vector<32x1xf32>
    %cst_18 = arith.constant 0.000000e+00 : f32
    %27 = vector.broadcast %cst_18 : f32 to vector<32x1xf32>
    %28 = arith.cmpf oge, %26, %27 : vector<32x1xf32>
    %c0_19 = arith.constant 0 : index
    %c0_20 = arith.constant 0 : index
    %29 = vector.load %arg10[%c0_19, %c0_20] : memref<32x1xf32, #tpu.memory_space<vmem>>, vector<32x1xf32>
    %30 = arith.mulf %29, %26 : vector<32x1xf32>
    %31 = arith.select %28, %26, %30 : vector<32x1xi1>, vector<32x1xf32>
    %c0_21 = arith.constant 0 : index
    %c0_22 = arith.constant 0 : index
    %32 = vector.load %arg11[%c0_21, %c0_22] : memref<8x32xf32, #tpu.memory_space<vmem>>, vector<8x32xf32>
    %cst_23 = arith.constant dense<0.000000e+00> : vector<8x1xf32>
    %33 = tpu.matmul %32, %31, %cst_23 {dimension_numbers = #tpu.dot_dimension_numbers<[1], [0], [0], [1], [0, 0, 1, 1], [], []>} : vector<8x32xf32>, vector<32x1xf32>, vector<8x1xf32> -> vector<8x1xf32>
    %cst_24 = arith.constant 0.176776692 : f32
    %34 = vector.broadcast %cst_24 : f32 to vector<8x1xf32>
    %35 = arith.mulf %33, %34 : vector<8x1xf32>
    %c0_25 = arith.constant 0 : index
    %c0_26 = arith.constant 0 : index
    %36 = vector.load %arg12[%c0_25, %c0_26] : memref<8x1xf32, #tpu.memory_space<vmem>>, vector<8x1xf32>
    %37 = arith.addf %35, %36 : vector<8x1xf32>
    %c0_27 = arith.constant 0 : index
    %c0_28 = arith.constant 0 : index
    %c0_29 = arith.constant 0 : index
    %38 = vector.load %arg13[%c0_27, %c0_28, %c0_29] : memref<9x8x8xf32, #tpu.memory_space<vmem>>, vector<9x8x8xf32>
    %39 = arith.mulf %38, %38 : vector<9x8x8xf32>
    %cst_30 = arith.constant dense<0.000000e+00> : vector<8x8xf32>
    %40 = vector.multi_reduction <add>, %39, %cst_30 [0] : vector<9x8x8xf32> to vector<8x8xf32>
    %41 = arith.mulf %37, %37 : vector<8x1xf32>
    %cst_31 = arith.constant dense<0.000000e+00> : vector<8x1xf32>
    %42 = tpu.matmul %40, %41, %cst_31 {dimension_numbers = #tpu.dot_dimension_numbers<[1], [0], [0], [1], [0, 0, 1, 1], [], []>} : vector<8x8xf32>, vector<8x1xf32>, vector<8x1xf32> -> vector<8x1xf32>
    %cst_32 = arith.constant 0.013888889 : f32
    %43 = vector.broadcast %cst_32 : f32 to vector<8x1xf32>
    %44 = arith.mulf %42, %43 : vector<8x1xf32>
    %cst_33 = arith.constant 9.99999993E-9 : f32
    %45 = vector.broadcast %cst_33 : f32 to vector<8x1xf32>
    %46 = arith.addf %44, %45 : vector<8x1xf32>
    %47 = math.rsqrt %46 : vector<8x1xf32>
    %cst_34 = arith.constant 0.117851131 : f32
    %48 = vector.broadcast %cst_34 : f32 to vector<8x1xf32>
    %49 = arith.mulf %47, %48 : vector<8x1xf32>
    %cst_35 = arith.constant 0.000000e+00 : f32
    %50 = vector.broadcast %cst_35 : f32 to vector<8x256xf32>
    %c0_36 = arith.constant 0 : index
    %c0_37 = arith.constant 0 : index
    %c0_38 = arith.constant 0 : index
    %c0_39 = arith.constant 0 : index
    %51 = vector.load %arg3[%c0_36, %c0_37, %c0_38, %c0_39] : memref<1x9x8x256xf32, #tpu.memory_space<vmem>>, vector<1x1x8x256xf32>
    %52 = vector.shape_cast %51 : vector<1x1x8x256xf32> to vector<8x256xf32>
    %53 = vector.broadcast %37 : vector<8x1xf32> to vector<8x256xf32>
    %54 = arith.mulf %52, %53 : vector<8x256xf32>
    %55 = vector.extract_strided_slice %38 {offsets = [0, 0, 0], sizes = [1, 8, 8], strides = [1, 1, 1]} : vector<9x8x8xf32> to vector<1x8x8xf32>
    %56 = vector.shape_cast %55 : vector<1x8x8xf32> to vector<8x8xf32>
    %cst_40 = arith.constant dense<0.000000e+00> : vector<8x256xf32>
    %57 = tpu.matmul %56, %54, %cst_40 {dimension_numbers = #tpu.dot_dimension_numbers<[1], [0], [0], [1], [0, 0, 1, 1], [], []>} : vector<8x8xf32>, vector<8x256xf32>, vector<8x256xf32> -> vector<8x256xf32>
    %58 = arith.addf %50, %57 : vector<8x256xf32>
    %c0_41 = arith.constant 0 : index
    %c1 = arith.constant 1 : index
    %c0_42 = arith.constant 0 : index
    %c0_43 = arith.constant 0 : index
    %59 = vector.load %arg3[%c0_41, %c1, %c0_42, %c0_43] : memref<1x9x8x256xf32, #tpu.memory_space<vmem>>, vector<1x1x8x256xf32>
    %60 = vector.shape_cast %59 : vector<1x1x8x256xf32> to vector<8x256xf32>
    %61 = vector.broadcast %37 : vector<8x1xf32> to vector<8x256xf32>
    %62 = arith.mulf %60, %61 : vector<8x256xf32>
    %63 = vector.extract_strided_slice %38 {offsets = [1, 0, 0], sizes = [1, 8, 8], strides = [1, 1, 1]} : vector<9x8x8xf32> to vector<1x8x8xf32>
    %64 = vector.shape_cast %63 : vector<1x8x8xf32> to vector<8x8xf32>
    %cst_44 = arith.constant dense<0.000000e+00> : vector<8x256xf32>
    %65 = tpu.matmul %64, %62, %cst_44 {dimension_numbers = #tpu.dot_dimension_numbers<[1], [0], [0], [1], [0, 0, 1, 1], [], []>} : vector<8x8xf32>, vector<8x256xf32>, vector<8x256xf32> -> vector<8x256xf32>
    %66 = arith.addf %58, %65 : vector<8x256xf32>
    %c0_45 = arith.constant 0 : index
    %c2 = arith.constant 2 : index
    %c0_46 = arith.constant 0 : index
    %c0_47 = arith.constant 0 : index
    %67 = vector.load %arg3[%c0_45, %c2, %c0_46, %c0_47] : memref<1x9x8x256xf32, #tpu.memory_space<vmem>>, vector<1x1x8x256xf32>
    %68 = vector.shape_cast %67 : vector<1x1x8x256xf32> to vector<8x256xf32>
    %69 = vector.broadcast %37 : vector<8x1xf32> to vector<8x256xf32>
    %70 = arith.mulf %68, %69 : vector<8x256xf32>
    %71 = vector.extract_strided_slice %38 {offsets = [2, 0, 0], sizes = [1, 8, 8], strides = [1, 1, 1]} : vector<9x8x8xf32> to vector<1x8x8xf32>
    %72 = vector.shape_cast %71 : vector<1x8x8xf32> to vector<8x8xf32>
    %cst_48 = arith.constant dense<0.000000e+00> : vector<8x256xf32>
    %73 = tpu.matmul %72, %70, %cst_48 {dimension_numbers = #tpu.dot_dimension_numbers<[1], [0], [0], [1], [0, 0, 1, 1], [], []>} : vector<8x8xf32>, vector<8x256xf32>, vector<8x256xf32> -> vector<8x256xf32>
    %74 = arith.addf %66, %73 : vector<8x256xf32>
    %c0_49 = arith.constant 0 : index
    %c3 = arith.constant 3 : index
    %c0_50 = arith.constant 0 : index
    %c0_51 = arith.constant 0 : index
    %75 = vector.load %arg3[%c0_49, %c3, %c0_50, %c0_51] : memref<1x9x8x256xf32, #tpu.memory_space<vmem>>, vector<1x1x8x256xf32>
    %76 = vector.shape_cast %75 : vector<1x1x8x256xf32> to vector<8x256xf32>
    %77 = vector.broadcast %37 : vector<8x1xf32> to vector<8x256xf32>
    %78 = arith.mulf %76, %77 : vector<8x256xf32>
    %79 = vector.extract_strided_slice %38 {offsets = [3, 0, 0], sizes = [1, 8, 8], strides = [1, 1, 1]} : vector<9x8x8xf32> to vector<1x8x8xf32>
    %80 = vector.shape_cast %79 : vector<1x8x8xf32> to vector<8x8xf32>
    %cst_52 = arith.constant dense<0.000000e+00> : vector<8x256xf32>
    %81 = tpu.matmul %80, %78, %cst_52 {dimension_numbers = #tpu.dot_dimension_numbers<[1], [0], [0], [1], [0, 0, 1, 1], [], []>} : vector<8x8xf32>, vector<8x256xf32>, vector<8x256xf32> -> vector<8x256xf32>
    %82 = arith.addf %74, %81 : vector<8x256xf32>
    %c0_53 = arith.constant 0 : index
    %c4 = arith.constant 4 : index
    %c0_54 = arith.constant 0 : index
    %c0_55 = arith.constant 0 : index
    %83 = vector.load %arg3[%c0_53, %c4, %c0_54, %c0_55] : memref<1x9x8x256xf32, #tpu.memory_space<vmem>>, vector<1x1x8x256xf32>
    %84 = vector.shape_cast %83 : vector<1x1x8x256xf32> to vector<8x256xf32>
    %85 = vector.broadcast %37 : vector<8x1xf32> to vector<8x256xf32>
    %86 = arith.mulf %84, %85 : vector<8x256xf32>
    %87 = vector.extract_strided_slice %38 {offsets = [4, 0, 0], sizes = [1, 8, 8], strides = [1, 1, 1]} : vector<9x8x8xf32> to vector<1x8x8xf32>
    %88 = vector.shape_cast %87 : vector<1x8x8xf32> to vector<8x8xf32>
    %cst_56 = arith.constant dense<0.000000e+00> : vector<8x256xf32>
    %89 = tpu.matmul %88, %86, %cst_56 {dimension_numbers = #tpu.dot_dimension_numbers<[1], [0], [0], [1], [0, 0, 1, 1], [], []>} : vector<8x8xf32>, vector<8x256xf32>, vector<8x256xf32> -> vector<8x256xf32>
    %90 = arith.addf %82, %89 : vector<8x256xf32>
    %c0_57 = arith.constant 0 : index
    %c5 = arith.constant 5 : index
    %c0_58 = arith.constant 0 : index
    %c0_59 = arith.constant 0 : index
    %91 = vector.load %arg3[%c0_57, %c5, %c0_58, %c0_59] : memref<1x9x8x256xf32, #tpu.memory_space<vmem>>, vector<1x1x8x256xf32>
    %92 = vector.shape_cast %91 : vector<1x1x8x256xf32> to vector<8x256xf32>
    %93 = vector.broadcast %37 : vector<8x1xf32> to vector<8x256xf32>
    %94 = arith.mulf %92, %93 : vector<8x256xf32>
    %95 = vector.extract_strided_slice %38 {offsets = [5, 0, 0], sizes = [1, 8, 8], strides = [1, 1, 1]} : vector<9x8x8xf32> to vector<1x8x8xf32>
    %96 = vector.shape_cast %95 : vector<1x8x8xf32> to vector<8x8xf32>
    %cst_60 = arith.constant dense<0.000000e+00> : vector<8x256xf32>
    %97 = tpu.matmul %96, %94, %cst_60 {dimension_numbers = #tpu.dot_dimension_numbers<[1], [0], [0], [1], [0, 0, 1, 1], [], []>} : vector<8x8xf32>, vector<8x256xf32>, vector<8x256xf32> -> vector<8x256xf32>
    %98 = arith.addf %90, %97 : vector<8x256xf32>
    %c0_61 = arith.constant 0 : index
    %c6 = arith.constant 6 : index
    %c0_62 = arith.constant 0 : index
    %c0_63 = arith.constant 0 : index
    %99 = vector.load %arg3[%c0_61, %c6, %c0_62, %c0_63] : memref<1x9x8x256xf32, #tpu.memory_space<vmem>>, vector<1x1x8x256xf32>
    %100 = vector.shape_cast %99 : vector<1x1x8x256xf32> to vector<8x256xf32>
    %101 = vector.broadcast %37 : vector<8x1xf32> to vector<8x256xf32>
    %102 = arith.mulf %100, %101 : vector<8x256xf32>
    %103 = vector.extract_strided_slice %38 {offsets = [6, 0, 0], sizes = [1, 8, 8], strides = [1, 1, 1]} : vector<9x8x8xf32> to vector<1x8x8xf32>
    %104 = vector.shape_cast %103 : vector<1x8x8xf32> to vector<8x8xf32>
    %cst_64 = arith.constant dense<0.000000e+00> : vector<8x256xf32>
    %105 = tpu.matmul %104, %102, %cst_64 {dimension_numbers = #tpu.dot_dimension_numbers<[1], [0], [0], [1], [0, 0, 1, 1], [], []>} : vector<8x8xf32>, vector<8x256xf32>, vector<8x256xf32> -> vector<8x256xf32>
    %106 = arith.addf %98, %105 : vector<8x256xf32>
    %c0_65 = arith.constant 0 : index
    %c7 = arith.constant 7 : index
    %c0_66 = arith.constant 0 : index
    %c0_67 = arith.constant 0 : index
    %107 = vector.load %arg3[%c0_65, %c7, %c0_66, %c0_67] : memref<1x9x8x256xf32, #tpu.memory_space<vmem>>, vector<1x1x8x256xf32>
    %108 = vector.shape_cast %107 : vector<1x1x8x256xf32> to vector<8x256xf32>
    %109 = vector.broadcast %37 : vector<8x1xf32> to vector<8x256xf32>
    %110 = arith.mulf %108, %109 : vector<8x256xf32>
    %111 = vector.extract_strided_slice %38 {offsets = [7, 0, 0], sizes = [1, 8, 8], strides = [1, 1, 1]} : vector<9x8x8xf32> to vector<1x8x8xf32>
    %112 = vector.shape_cast %111 : vector<1x8x8xf32> to vector<8x8xf32>
    %cst_68 = arith.constant dense<0.000000e+00> : vector<8x256xf32>
    %113 = tpu.matmul %112, %110, %cst_68 {dimension_numbers = #tpu.dot_dimension_numbers<[1], [0], [0], [1], [0, 0, 1, 1], [], []>} : vector<8x8xf32>, vector<8x256xf32>, vector<8x256xf32> -> vector<8x256xf32>
    %114 = arith.addf %106, %113 : vector<8x256xf32>
    %c0_69 = arith.constant 0 : index
    %c8 = arith.constant 8 : index
    %c0_70 = arith.constant 0 : index
    %c0_71 = arith.constant 0 : index
    %115 = vector.load %arg3[%c0_69, %c8, %c0_70, %c0_71] : memref<1x9x8x256xf32, #tpu.memory_space<vmem>>, vector<1x1x8x256xf32>
    %116 = vector.shape_cast %115 : vector<1x1x8x256xf32> to vector<8x256xf32>
    %117 = vector.broadcast %37 : vector<8x1xf32> to vector<8x256xf32>
    %118 = arith.mulf %116, %117 : vector<8x256xf32>
    %119 = vector.extract_strided_slice %38 {offsets = [8, 0, 0], sizes = [1, 8, 8], strides = [1, 1, 1]} : vector<9x8x8xf32> to vector<1x8x8xf32>
    %120 = vector.shape_cast %119 : vector<1x8x8xf32> to vector<8x8xf32>
    %cst_72 = arith.constant dense<0.000000e+00> : vector<8x256xf32>
    %121 = tpu.matmul %120, %118, %cst_72 {dimension_numbers = #tpu.dot_dimension_numbers<[1], [0], [0], [1], [0, 0, 1, 1], [], []>} : vector<8x8xf32>, vector<8x256xf32>, vector<8x256xf32> -> vector<8x256xf32>
    %122 = arith.addf %114, %121 : vector<8x256xf32>
    %123 = vector.broadcast %49 : vector<8x1xf32> to vector<8x256xf32>
    %124 = arith.mulf %122, %123 : vector<8x256xf32>
    %c0_73 = arith.constant 0 : index
    %125 = memref.load %arg1[%c0_73] : memref<1xf32, #tpu.memory_space<smem>>
    %c0_74 = arith.constant 0 : index
    %c0_75 = arith.constant 0 : index
    %c0_76 = arith.constant 0 : index
    %126 = vector.load %arg4[%c0_74, %c0_75, %c0_76] : memref<1x1x256xf32, #tpu.memory_space<vmem>>, vector<1x1x256xf32>
    %127 = vector.shape_cast %126 : vector<1x1x256xf32> to vector<1x256xf32>
    %128 = vector.broadcast %125 : f32 to vector<1x256xf32>
    %129 = arith.mulf %128, %127 : vector<1x256xf32>
    %130 = vector.broadcast %129 : vector<1x256xf32> to vector<8x256xf32>
    %131 = arith.addf %124, %130 : vector<8x256xf32>
    %c0_77 = arith.constant 0 : index
    %c0_78 = arith.constant 0 : index
    %132 = vector.load %arg14[%c0_77, %c0_78] : memref<8x1xf32, #tpu.memory_space<vmem>>, vector<8x1xf32>
    %133 = vector.broadcast %132 : vector<8x1xf32> to vector<8x256xf32>
    %134 = arith.addf %131, %133 : vector<8x256xf32>
    %cst_79 = arith.constant 0.000000e+00 : f32
    %135 = vector.broadcast %cst_79 : f32 to vector<8x256xf32>
    %136 = arith.cmpf oge, %134, %135 : vector<8x256xf32>
    %c0_80 = arith.constant 0 : index
    %c0_81 = arith.constant 0 : index
    %137 = vector.load %arg15[%c0_80, %c0_81] : memref<8x1xf32, #tpu.memory_space<vmem>>, vector<8x1xf32>
    %138 = vector.broadcast %137 : vector<8x1xf32> to vector<8x256xf32>
    %139 = arith.mulf %138, %134 : vector<8x256xf32>
    %140 = arith.select %136, %134, %139 : vector<8x256xi1>, vector<8x256xf32>
    %c0_82 = arith.constant 0 : index
    %c0_83 = arith.constant 0 : index
    %c0_84 = arith.constant 0 : index
    %141 = vector.load %arg16[%c0_82, %c0_83, %c0_84] : memref<1x8x256xf32, #tpu.memory_space<vmem>>, vector<1x8x256xf32>
    %142 = vector.shape_cast %141 : vector<1x8x256xf32> to vector<8x256xf32>
    %143 = vector.shape_cast %140 : vector<8x256xf32> to vector<1x8x256xf32>
    tpu.vector_store %arg16[%c0_82, %c0_83, %c0_84], %143 {strides = array<i32>} : memref<1x8x256xf32, #tpu.memory_space<vmem>>, vector<1x8x256xf32>,
    return
  }
  func.func @transform_0(%arg0: i32) -> i32 {
    %c0_i32 = arith.constant 0 : i32
    %c0_i32_0 = arith.constant 0 : i32
    return %c0_i32 : i32
  }
  func.func @transform_1(%arg0: i32) -> (i32, i32, i32) {
    %c0_i32 = arith.constant 0 : i32
    %c0_i32_0 = arith.constant 0 : i32
    %c0_i32_1 = arith.constant 0 : i32
    return %arg0, %c0_i32, %c0_i32_0 : i32, i32, i32
  }
  func.func @transform_2(%arg0: i32) -> (i32, i32, i32, i32) {
    %c0_i32 = arith.constant 0 : i32
    %c0_i32_0 = arith.constant 0 : i32
    %c0_i32_1 = arith.constant 0 : i32
    %c0_i32_2 = arith.constant 0 : i32
    return %arg0, %c0_i32, %c0_i32_0, %c0_i32_1 : i32, i32, i32, i32
  }
  func.func @transform_3(%arg0: i32) -> (i32, i32, i32) {
    %c0_i32 = arith.constant 0 : i32
    %c0_i32_0 = arith.constant 0 : i32
    %c0_i32_1 = arith.constant 0 : i32
    return %arg0, %c0_i32, %c0_i32_0 : i32, i32, i32
  }
  func.func @transform_4(%arg0: i32) -> (i32, i32) {
    %c0_i32 = arith.constant 0 : i32
    %c0_i32_0 = arith.constant 0 : i32
    %c0_i32_1 = arith.constant 0 : i32
    return %c0_i32, %c0_i32_0 : i32, i32
  }
  func.func @transform_5(%arg0: i32) -> (i32, i32) {
    %c0_i32 = arith.constant 0 : i32
    %c0_i32_0 = arith.constant 0 : i32
    %c0_i32_1 = arith.constant 0 : i32
    return %c0_i32, %c0_i32_0 : i32, i32
  }
  func.func @transform_6(%arg0: i32) -> (i32, i32) {
    %c0_i32 = arith.constant 0 : i32
    %c0_i32_0 = arith.constant 0 : i32
    %c0_i32_1 = arith.constant 0 : i32
    return %c0_i32, %c0_i32_0 : i32, i32
  }
  func.func @transform_7(%arg0: i32) -> (i32, i32) {
    %c0_i32 = arith.constant 0 : i32
    %c0_i32_0 = arith.constant 0 : i32
    %c0_i32_1 = arith.constant 0 : i32
    return %c0_i32, %c0_i32_0 : i32, i32
  }
  func.func @transform_8(%arg0: i32) -> (i32, i32) {
    %c0_i32 = arith.constant 0 : i32
    %c0_i32_0 = arith.constant 0 : i32
    %c0_i32_1 = arith.constant 0 : i32
    return %c0_i32, %c0_i32_0 : i32, i32
  }
  func.func @transform_9(%arg0: i32) -> (i32, i32) {
    %c0_i32 = arith.constant 0 : i32
    %c0_i32_0 = arith.constant 0 : i32
    %c0_i32_1 = arith.constant 0 : i32
    return %c0_i32, %c0_i32_0 : i32, i32
  }
  func.func @transform_10(%arg0: i32) -> (i32, i32) {
    %c0_i32 = arith.constant 0 : i32
    %c0_i32_0 = arith.constant 0 : i32
    %c0_i32_1 = arith.constant 0 : i32
    return %c0_i32, %c0_i32_0 : i32, i32
  }
  func.func @transform_11(%arg0: i32) -> (i32, i32) {
    %c0_i32 = arith.constant 0 : i32
    %c0_i32_0 = arith.constant 0 : i32
    %c0_i32_1 = arith.constant 0 : i32
    return %c0_i32, %c0_i32_0 : i32, i32
  }
  func.func @transform_12(%arg0: i32) -> (i32, i32, i32) {
    %c0_i32 = arith.constant 0 : i32
    %c0_i32_0 = arith.constant 0 : i32
    %c0_i32_1 = arith.constant 0 : i32
    %c0_i32_2 = arith.constant 0 : i32
    return %c0_i32, %c0_i32_0, %c0_i32_1 : i32, i32, i32
  }
  func.func @transform_13(%arg0: i32) -> (i32, i32) {
    %c0_i32 = arith.constant 0 : i32
    %c0_i32_0 = arith.constant 0 : i32
    %c0_i32_1 = arith.constant 0 : i32
    return %c0_i32, %c0_i32_0 : i32, i32
  }
  func.func @transform_14(%arg0: i32) -> (i32, i32) {
    %c0_i32 = arith.constant 0 : i32
    %c0_i32_0 = arith.constant 0 : i32
    %c0_i32_1 = arith.constant 0 : i32
    return %c0_i32, %c0_i32_0 : i32, i32
  }
  func.func @transform_15(%arg0: i32) -> (i32, i32, i32) {
    %c0_i32 = arith.constant 0 : i32
    %c0_i32_0 = arith.constant 0 : i32
    %c0_i32_1 = arith.constant 0 : i32
    return %arg0, %c0_i32, %c0_i32_0 : i32, i32, i32
  }
}

module attributes {stable_mosaic.version = 11 : i64} {
  func.func @_style_conv_kernel(%arg0: i32, %arg1: memref<1xf32, #tpu.memory_space<smem>>, %arg2: memref<1x32x1xf32, #tpu.memory_space<vmem>>, %arg3: memref<1x9x8x256xf32, #tpu.memory_space<vmem>>, %arg4: memref<1x1x256xf32, #tpu.memory_space<vmem>>, %arg5: memref<32x32xf32, #tpu.memory_space<vmem>>, %arg6: memref<32x1xf32, #tpu.memory_space<vmem>>, %arg7: memref<32x1xf32, #tpu.memory_space<vmem>>, %arg8: memref<32x32xf32, #tpu.memory_space<vmem>>, %arg9: memref<32x1xf32, #tpu.memory_space<vmem>>, %arg10: memref<32x1xf32, #tpu.memory_space<vmem>>, %arg11: memref<8x32xf32, #tpu.memory_space<vmem>>, %arg12: memref<8x1xf32, #tpu.memory_space<vmem>>, %arg13: memref<9x12x8xf32, #tpu.memory_space<vmem>>, %arg14: memref<12x1xf32, #tpu.memory_space<vmem>>, %arg15: memref<12x1xf32, #tpu.memory_space<vmem>>, %arg16: memref<1x12x256xf32, #tpu.memory_space<vmem>>) attributes {dimension_semantics = [#tpu.dimension_semantics<parallel>], iteration_bounds = array<i64: 2>, scalar_prefetch = 0 : i64, scratch_operands = 0 : i64, tpu.core_type = #tpu.core_type<tc>, window_params = [{transform_indices = @transform_0, window_bounds = array<i64: 1>}, {transform_indices = @transform_1, window_bounds = array<i64: 1, 32, 1>}, {transform_indices = @transform_2, window_bounds = array<i64: 1, 9, 8, 256>}, {transform_indices = @transform_3, window_bounds = array<i64: 1, 1, 256>}, {pipeline_mode = #tpu.pipeline_mode<synchronous>, transform_indices = @transform_4, window_bounds = array<i64: 32, 32>}, {pipeline_mode = #tpu.pipeline_mode<synchronous>, transform_indices = @transform_5, window_bounds = array<i64: 32, 1>}, {pipeline_mode = #tpu.pipeline_mode<synchronous>, transform_indices = @transform_6, window_bounds = array<i64: 32, 1>}, {pipeline_mode = #tpu.pipeline_mode<synchronous>, transform_indices = @transform_7, window_bounds = array<i64: 32, 32>}, {pipeline_mode = #tpu.pipeline_mode<synchronous>, transform_indices = @transform_8, window_bounds = array<i64: 32, 1>}, {pipeline_mode = #tpu.pipeline_mode<synchronous>, transform_indices = @transform_9, window_bounds = array<i64: 32, 1>}, {pipeline_mode = #tpu.pipeline_mode<synchronous>, transform_indices = @transform_10, window_bounds = array<i64: 8, 32>}, {pipeline_mode = #tpu.pipeline_mode<synchronous>, transform_indices = @transform_11, window_bounds = array<i64: 8, 1>}, {pipeline_mode = #tpu.pipeline_mode<synchronous>, transform_indices = @transform_12, window_bounds = array<i64: 9, 12, 8>}, {pipeline_mode = #tpu.pipeline_mode<synchronous>, transform_indices = @transform_13, window_bounds = array<i64: 12, 1>}, {pipeline_mode = #tpu.pipeline_mode<synchronous>, transform_indices = @transform_14, window_bounds = array<i64: 12, 1>}, {transform_indices = @transform_15, window_bounds = array<i64: 1, 12, 256>}]} {
    %c0 = arith.constant 0 : index
    %c0_0 = arith.constant 0 : index
    %c0_1 = arith.constant 0 : index
    %0 = vector.load %arg2[%c0, %c0_0, %c0_1] : memref<1x32x1xf32, #tpu.memory_space<vmem>>, vector<1x32x1xf32>
    %1 = vector.shape_cast %0 : vector<1x32x1xf32> to vector<32x1xf32>
    %2 = arith.mulf %1, %1 : vector<32x1xf32>
    %cst = arith.constant dense<0.000000e+00> : vector<1xf32>
    %3 = vector.multi_reduction <add>, %2, %cst [0] : vector<32x1xf32> to vector<1xf32>
    %4 = vector.shape_cast %3 : vector<1xf32> to vector<1x1xf32>
    %5 = math.sqrt %4 : vector<1x1xf32>
    %cst_2 = arith.constant 9.99999996E-13 : f32
    %6 = vector.broadcast %cst_2 : f32 to vector<1x1xf32>
    %7 = arith.maximumf %5, %6 : vector<1x1xf32>
    %8 = vector.broadcast %7 : vector<1x1xf32> to vector<32x1xf32>
    %9 = arith.divf %1, %8 : vector<32x1xf32>
    %c0_3 = arith.constant 0 : index
    %c0_4 = arith.constant 0 : index
    %10 = vector.load %arg5[%c0_3, %c0_4] : memref<32x32xf32, #tpu.memory_space<vmem>>, vector<32x32xf32>
    %cst_5 = arith.constant dense<0.000000e+00> : vector<32x1xf32>
    %11 = tpu.matmul %10, %9, %cst_5 {dimension_numbers = #tpu.dot_dimension_numbers<[1], [0], [0], [1], [0, 0, 1, 1], [], []>} : vector<32x32xf32>, vector<32x1xf32>, vector<32x1xf32> -> vector<32x1xf32>
    %cst_6 = arith.constant 0.176776692 : f32
    %12 = vector.broadcast %cst_6 : f32 to vector<32x1xf32>
    %13 = arith.mulf %11, %12 : vector<32x1xf32>
    %c0_7 = arith.constant 0 : index
    %c0_8 = arith.constant 0 : index
    %14 = vector.load %arg6[%c0_7, %c0_8] : memref<32x1xf32, #tpu.memory_space<vmem>>, vector<32x1xf32>
    %15 = arith.addf %13, %14 : vector<32x1xf32>
    %cst_9 = arith.constant 0.000000e+00 : f32
    %16 = vector.broadcast %cst_9 : f32 to vector<32x1xf32>
    %17 = arith.cmpf oge, %15, %16 : vector<32x1xf32>
    %c0_10 = arith.constant 0 : index
    %c0_11 = arith.constant 0 : index
    %18 = vector.load %arg7[%c0_10, %c0_11] : memref<32x1xf32, #tpu.memory_space<vmem>>, vector<32x1xf32>
    %19 = arith.mulf %18, %15 : vector<32x1xf32>
    %20 = arith.select %17, %15, %19 : vector<32x1xi1>, vector<32x1xf32>
    %c0_12 = arith.constant 0 : index
    %c0_13 = arith.constant 0 : index
    %21 = vector.load %arg8[%c0_12, %c0_13] : memref<32x32xf32, #tpu.memory_space<vmem>>, vector<32x32xf32>
    %cst_14 = arith.constant dense<0.000000e+00> : vector<32x1xf32>
    %22 = tpu.matmul %21, %20, %cst_14 {dimension_numbers = #tpu.dot_dimension_numbers<[1], [0], [0], [1], [0, 0, 1, 1], [], []>} : vector<32x32xf32>, vector<32x1xf32>, vector<32x1xf32> -> vector<32x1xf32>
    %cst_15 = arith.constant 0.176776692 : f32
    %23 = vector.broadcast %cst_15 : f32 to vector<32x1xf32>
    %24 = arith.mulf %22, %23 : vector<32x1xf32>
    %c0_16 = arith.constant 0 : index
    %c0_17 = arith.constant 0 : index
    %25 = vector.load %arg9[%c0_16, %c0_17] : memref<32x1xf32, #tpu.memory_space<vmem>>, vector<32x1xf32>
    %26 = arith.addf %24, %25 : vector<32x1xf32>
    %cst_18 = arith.constant 0.000000e+00 : f32
    %27 = vector.broadcast %cst_18 : f32 to vector<32x1xf32>
    %28 = arith.cmpf oge, %26, %27 : vector<32x1xf32>
    %c0_19 = arith.constant 0 : index
    %c0_20 = arith.constant 0 : index
    %29 = vector.load %arg10[%c0_19, %c0_20] : memref<32x1xf32, #tpu.memory_space<vmem>>, vector<32x1xf32>
    %30 = arith.mulf %29, %26 : vector<32x1xf32>
    %31 = arith.select %28, %26, %30 : vector<32x1xi1>, vector<32x1xf32>
    %c0_21 = arith.constant 0 : index
    %c0_22 = arith.constant 0 : index
    %32 = vector.load %arg11[%c0_21, %c0_22] : memref<8x32xf32, #tpu.memory_space<vmem>>, vector<8x32xf32>
    %cst_23 = arith.constant dense<0.000000e+00> : vector<8x1xf32>
    %33 = tpu.matmul %32, %31, %cst_23 {dimension_numbers = #tpu.dot_dimension_numbers<[1], [0], [0], [1], [0, 0, 1, 1], [], []>} : vector<8x32xf32>, vector<32x1xf32>, vector<8x1xf32> -> vector<8x1xf32>
    %cst_24 = arith.constant 0.176776692 : f32
    %34 = vector.broadcast %cst_24 : f32 to vector<8x1xf32>
    %35 = arith.mulf %33, %34 : vector<8x1xf32>
    %c0_25 = arith.constant 0 : index
    %c0_26 = arith.constant 0 : index
    %36 = vector.load %arg12[%c0_25, %c0_26] : memref<8x1xf32, #tpu.memory_space<vmem>>, vector<8x1xf32>
    %37 = arith.addf %35, %36 : vector<8x1xf32>
    %c0_27 = arith.constant 0 : index
    %c0_28 = arith.constant 0 : index
    %c0_29 = arith.constant 0 : index
    %38 = vector.load %arg13[%c0_27, %c0_28, %c0_29] : memref<9x12x8xf32, #tpu.memory_space<vmem>>, vector<9x12x8xf32>
    %39 = arith.mulf %38, %38 : vector<9x12x8xf32>
    %cst_30 = arith.constant dense<0.000000e+00> : vector<12x8xf32>
    %40 = vector.multi_reduction <add>, %39, %cst_30 [0] : vector<9x12x8xf32> to vector<12x8xf32>
    %41 = arith.mulf %37, %37 : vector<8x1xf32>
    %cst_31 = arith.constant dense<0.000000e+00> : vector<12x1xf32>
    %42 = tpu.matmul %40, %41, %cst_31 {dimension_numbers = #tpu.dot_dimension_numbers<[1], [0], [0], [1], [0, 0, 1, 1], [], []>} : vector<12x8xf32>, vector<8x1xf32>, vector<12x1xf32> -> vector<12x1xf32>
    %cst_32 = arith.constant 0.013888889 : f32
    %43 = vector.broadcast %cst_32 : f32 to vector<12x1xf32>
    %44 = arith.mulf %42, %43 : vector<12x1xf32>
    %cst_33 = arith.constant 9.99999993E-9 : f32
    %45 = vector.broadcast %cst_33 : f32 to vector<12x1xf32>
    %46 = arith.addf %44, %45 : vector<12x1xf32>
    %47 = math.rsqrt %46 : vector<12x1xf32>
    %cst_34 = arith.constant 0.117851131 : f32
    %48 = vector.broadcast %cst_34 : f32 to vector<12x1xf32>
    %49 = arith.mulf %47, %48 : vector<12x1xf32>
    %cst_35 = arith.constant 0.000000e+00 : f32
    %50 = vector.broadcast %cst_35 : f32 to vector<12x256xf32>
    %c0_36 = arith.constant 0 : index
    %c0_37 = arith.constant 0 : index
    %c0_38 = arith.constant 0 : index
    %c0_39 = arith.constant 0 : index
    %51 = vector.load %arg3[%c0_36, %c0_37, %c0_38, %c0_39] : memref<1x9x8x256xf32, #tpu.memory_space<vmem>>, vector<1x1x8x256xf32>
    %52 = vector.shape_cast %51 : vector<1x1x8x256xf32> to vector<8x256xf32>
    %53 = vector.broadcast %37 : vector<8x1xf32> to vector<8x256xf32>
    %54 = arith.mulf %52, %53 : vector<8x256xf32>
    %55 = vector.extract_strided_slice %38 {offsets = [0, 0, 0], sizes = [1, 12, 8], strides = [1, 1, 1]} : vector<9x12x8xf32> to vector<1x12x8xf32>
    %56 = vector.shape_cast %55 : vector<1x12x8xf32> to vector<12x8xf32>
    %cst_40 = arith.constant dense<0.000000e+00> : vector<12x256xf32>
    %57 = tpu.matmul %56, %54, %cst_40 {dimension_numbers = #tpu.dot_dimension_numbers<[1], [0], [0], [1], [0, 0, 1, 1], [], []>} : vector<12x8xf32>, vector<8x256xf32>, vector<12x256xf32> -> vector<12x256xf32>
    %58 = arith.addf %50, %57 : vector<12x256xf32>
    %c0_41 = arith.constant 0 : index
    %c1 = arith.constant 1 : index
    %c0_42 = arith.constant 0 : index
    %c0_43 = arith.constant 0 : index
    %59 = vector.load %arg3[%c0_41, %c1, %c0_42, %c0_43] : memref<1x9x8x256xf32, #tpu.memory_space<vmem>>, vector<1x1x8x256xf32>
    %60 = vector.shape_cast %59 : vector<1x1x8x256xf32> to vector<8x256xf32>
    %61 = vector.broadcast %37 : vector<8x1xf32> to vector<8x256xf32>
    %62 = arith.mulf %60, %61 : vector<8x256xf32>
    %63 = vector.extract_strided_slice %38 {offsets = [1, 0, 0], sizes = [1, 12, 8], strides = [1, 1, 1]} : vector<9x12x8xf32> to vector<1x12x8xf32>
    %64 = vector.shape_cast %63 : vector<1x12x8xf32> to vector<12x8xf32>
    %cst_44 = arith.constant dense<0.000000e+00> : vector<12x256xf32>
    %65 = tpu.matmul %64, %62, %cst_44 {dimension_numbers = #tpu.dot_dimension_numbers<[1], [0], [0], [1], [0, 0, 1, 1], [], []>} : vector<12x8xf32>, vector<8x256xf32>, vector<12x256xf32> -> vector<12x256xf32>
    %66 = arith.addf %58, %65 : vector<12x256xf32>
    %c0_45 = arith.constant 0 : index
    %c2 = arith.constant 2 : index
    %c0_46 = arith.constant 0 : index
    %c0_47 = arith.constant 0 : index
    %67 = vector.load %arg3[%c0_45, %c2, %c0_46, %c0_47] : memref<1x9x8x256xf32, #tpu.memory_space<vmem>>, vector<1x1x8x256xf32>
    %68 = vector.shape_cast %67 : vector<1x1x8x256xf32> to vector<8x256xf32>
    %69 = vector.broadcast %37 : vector<8x1xf32> to vector<8x256xf32>
    %70 = arith.mulf %68, %69 : vector<8x256xf32>
    %71 = vector.extract_strided_slice %38 {offsets = [2, 0, 0], sizes = [1, 12, 8], strides = [1, 1, 1]} : vector<9x12x8xf32> to vector<1x12x8xf32>
    %72 = vector.shape_cast %71 : vector<1x12x8xf32> to vector<12x8xf32>
    %cst_48 = arith.constant dense<0.000000e+00> : vector<12x256xf32>
    %73 = tpu.matmul %72, %70, %cst_48 {dimension_numbers = #tpu.dot_dimension_numbers<[1], [0], [0], [1], [0, 0, 1, 1], [], []>} : vector<12x8xf32>, vector<8x256xf32>, vector<12x256xf32> -> vector<12x256xf32>
    %74 = arith.addf %66, %73 : vector<12x256xf32>
    %c0_49 = arith.constant 0 : index
    %c3 = arith.constant 3 : index
    %c0_50 = arith.constant 0 : index
    %c0_51 = arith.constant 0 : index
    %75 = vector.load %arg3[%c0_49, %c3, %c0_50, %c0_51] : memref<1x9x8x256xf32, #tpu.memory_space<vmem>>, vector<1x1x8x256xf32>
    %76 = vector.shape_cast %75 : vector<1x1x8x256xf32> to vector<8x256xf32>
    %77 = vector.broadcast %37 : vector<8x1xf32> to vector<8x256xf32>
    %78 = arith.mulf %76, %77 : vector<8x256xf32>
    %79 = vector.extract_strided_slice %38 {offsets = [3, 0, 0], sizes = [1, 12, 8], strides = [1, 1, 1]} : vector<9x12x8xf32> to vector<1x12x8xf32>
    %80 = vector.shape_cast %79 : vector<1x12x8xf32> to vector<12x8xf32>
    %cst_52 = arith.constant dense<0.000000e+00> : vector<12x256xf32>
    %81 = tpu.matmul %80, %78, %cst_52 {dimension_numbers = #tpu.dot_dimension_numbers<[1], [0], [0], [1], [0, 0, 1, 1], [], []>} : vector<12x8xf32>, vector<8x256xf32>, vector<12x256xf32> -> vector<12x256xf32>
    %82 = arith.addf %74, %81 : vector<12x256xf32>
    %c0_53 = arith.constant 0 : index
    %c4 = arith.constant 4 : index
    %c0_54 = arith.constant 0 : index
    %c0_55 = arith.constant 0 : index
    %83 = vector.load %arg3[%c0_53, %c4, %c0_54, %c0_55] : memref<1x9x8x256xf32, #tpu.memory_space<vmem>>, vector<1x1x8x256xf32>
    %84 = vector.shape_cast %83 : vector<1x1x8x256xf32> to vector<8x256xf32>
    %85 = vector.broadcast %37 : vector<8x1xf32> to vector<8x256xf32>
    %86 = arith.mulf %84, %85 : vector<8x256xf32>
    %87 = vector.extract_strided_slice %38 {offsets = [4, 0, 0], sizes = [1, 12, 8], strides = [1, 1, 1]} : vector<9x12x8xf32> to vector<1x12x8xf32>
    %88 = vector.shape_cast %87 : vector<1x12x8xf32> to vector<12x8xf32>
    %cst_56 = arith.constant dense<0.000000e+00> : vector<12x256xf32>
    %89 = tpu.matmul %88, %86, %cst_56 {dimension_numbers = #tpu.dot_dimension_numbers<[1], [0], [0], [1], [0, 0, 1, 1], [], []>} : vector<12x8xf32>, vector<8x256xf32>, vector<12x256xf32> -> vector<12x256xf32>
    %90 = arith.addf %82, %89 : vector<12x256xf32>
    %c0_57 = arith.constant 0 : index
    %c5 = arith.constant 5 : index
    %c0_58 = arith.constant 0 : index
    %c0_59 = arith.constant 0 : index
    %91 = vector.load %arg3[%c0_57, %c5, %c0_58, %c0_59] : memref<1x9x8x256xf32, #tpu.memory_space<vmem>>, vector<1x1x8x256xf32>
    %92 = vector.shape_cast %91 : vector<1x1x8x256xf32> to vector<8x256xf32>
    %93 = vector.broadcast %37 : vector<8x1xf32> to vector<8x256xf32>
    %94 = arith.mulf %92, %93 : vector<8x256xf32>
    %95 = vector.extract_strided_slice %38 {offsets = [5, 0, 0], sizes = [1, 12, 8], strides = [1, 1, 1]} : vector<9x12x8xf32> to vector<1x12x8xf32>
    %96 = vector.shape_cast %95 : vector<1x12x8xf32> to vector<12x8xf32>
    %cst_60 = arith.constant dense<0.000000e+00> : vector<12x256xf32>
    %97 = tpu.matmul %96, %94, %cst_60 {dimension_numbers = #tpu.dot_dimension_numbers<[1], [0], [0], [1], [0, 0, 1, 1], [], []>} : vector<12x8xf32>, vector<8x256xf32>, vector<12x256xf32> -> vector<12x256xf32>
    %98 = arith.addf %90, %97 : vector<12x256xf32>
    %c0_61 = arith.constant 0 : index
    %c6 = arith.constant 6 : index
    %c0_62 = arith.constant 0 : index
    %c0_63 = arith.constant 0 : index
    %99 = vector.load %arg3[%c0_61, %c6, %c0_62, %c0_63] : memref<1x9x8x256xf32, #tpu.memory_space<vmem>>, vector<1x1x8x256xf32>
    %100 = vector.shape_cast %99 : vector<1x1x8x256xf32> to vector<8x256xf32>
    %101 = vector.broadcast %37 : vector<8x1xf32> to vector<8x256xf32>
    %102 = arith.mulf %100, %101 : vector<8x256xf32>
    %103 = vector.extract_strided_slice %38 {offsets = [6, 0, 0], sizes = [1, 12, 8], strides = [1, 1, 1]} : vector<9x12x8xf32> to vector<1x12x8xf32>
    %104 = vector.shape_cast %103 : vector<1x12x8xf32> to vector<12x8xf32>
    %cst_64 = arith.constant dense<0.000000e+00> : vector<12x256xf32>
    %105 = tpu.matmul %104, %102, %cst_64 {dimension_numbers = #tpu.dot_dimension_numbers<[1], [0], [0], [1], [0, 0, 1, 1], [], []>} : vector<12x8xf32>, vector<8x256xf32>, vector<12x256xf32> -> vector<12x256xf32>
    %106 = arith.addf %98, %105 : vector<12x256xf32>
    %c0_65 = arith.constant 0 : index
    %c7 = arith.constant 7 : index
    %c0_66 = arith.constant 0 : index
    %c0_67 = arith.constant 0 : index
    %107 = vector.load %arg3[%c0_65, %c7, %c0_66, %c0_67] : memref<1x9x8x256xf32, #tpu.memory_space<vmem>>, vector<1x1x8x256xf32>
    %108 = vector.shape_cast %107 : vector<1x1x8x256xf32> to vector<8x256xf32>
    %109 = vector.broadcast %37 : vector<8x1xf32> to vector<8x256xf32>
    %110 = arith.mulf %108, %109 : vector<8x256xf32>
    %111 = vector.extract_strided_slice %38 {offsets = [7, 0, 0], sizes = [1, 12, 8], strides = [1, 1, 1]} : vector<9x12x8xf32> to vector<1x12x8xf32>
    %112 = vector.shape_cast %111 : vector<1x12x8xf32> to vector<12x8xf32>
    %cst_68 = arith.constant dense<0.000000e+00> : vector<12x256xf32>
    %113 = tpu.matmul %112, %110, %cst_68 {dimension_numbers = #tpu.dot_dimension_numbers<[1], [0], [0], [1], [0, 0, 1, 1], [], []>} : vector<12x8xf32>, vector<8x256xf32>, vector<12x256xf32> -> vector<12x256xf32>
    %114 = arith.addf %106, %113 : vector<12x256xf32>
    %c0_69 = arith.constant 0 : index
    %c8 = arith.constant 8 : index
    %c0_70 = arith.constant 0 : index
    %c0_71 = arith.constant 0 : index
    %115 = vector.load %arg3[%c0_69, %c8, %c0_70, %c0_71] : memref<1x9x8x256xf32, #tpu.memory_space<vmem>>, vector<1x1x8x256xf32>
    %116 = vector.shape_cast %115 : vector<1x1x8x256xf32> to vector<8x256xf32>
    %117 = vector.broadcast %37 : vector<8x1xf32> to vector<8x256xf32>
    %118 = arith.mulf %116, %117 : vector<8x256xf32>
    %119 = vector.extract_strided_slice %38 {offsets = [8, 0, 0], sizes = [1, 12, 8], strides = [1, 1, 1]} : vector<9x12x8xf32> to vector<1x12x8xf32>
    %120 = vector.shape_cast %119 : vector<1x12x8xf32> to vector<12x8xf32>
    %cst_72 = arith.constant dense<0.000000e+00> : vector<12x256xf32>
    %121 = tpu.matmul %120, %118, %cst_72 {dimension_numbers = #tpu.dot_dimension_numbers<[1], [0], [0], [1], [0, 0, 1, 1], [], []>} : vector<12x8xf32>, vector<8x256xf32>, vector<12x256xf32> -> vector<12x256xf32>
    %122 = arith.addf %114, %121 : vector<12x256xf32>
    %123 = vector.broadcast %49 : vector<12x1xf32> to vector<12x256xf32>
    %124 = arith.mulf %122, %123 : vector<12x256xf32>
    %c0_73 = arith.constant 0 : index
    %125 = memref.load %arg1[%c0_73] : memref<1xf32, #tpu.memory_space<smem>>
    %c0_74 = arith.constant 0 : index
    %c0_75 = arith.constant 0 : index
    %c0_76 = arith.constant 0 : index
    %126 = vector.load %arg4[%c0_74, %c0_75, %c0_76] : memref<1x1x256xf32, #tpu.memory_space<vmem>>, vector<1x1x256xf32>
    %127 = vector.shape_cast %126 : vector<1x1x256xf32> to vector<1x256xf32>
    %128 = vector.broadcast %125 : f32 to vector<1x256xf32>
    %129 = arith.mulf %128, %127 : vector<1x256xf32>
    %130 = vector.broadcast %129 : vector<1x256xf32> to vector<12x256xf32>
    %131 = arith.addf %124, %130 : vector<12x256xf32>
    %c0_77 = arith.constant 0 : index
    %c0_78 = arith.constant 0 : index
    %132 = vector.load %arg14[%c0_77, %c0_78] : memref<12x1xf32, #tpu.memory_space<vmem>>, vector<12x1xf32>
    %133 = vector.broadcast %132 : vector<12x1xf32> to vector<12x256xf32>
    %134 = arith.addf %131, %133 : vector<12x256xf32>
    %cst_79 = arith.constant 0.000000e+00 : f32
    %135 = vector.broadcast %cst_79 : f32 to vector<12x256xf32>
    %136 = arith.cmpf oge, %134, %135 : vector<12x256xf32>
    %c0_80 = arith.constant 0 : index
    %c0_81 = arith.constant 0 : index
    %137 = vector.load %arg15[%c0_80, %c0_81] : memref<12x1xf32, #tpu.memory_space<vmem>>, vector<12x1xf32>
    %138 = vector.broadcast %137 : vector<12x1xf32> to vector<12x256xf32>
    %139 = arith.mulf %138, %134 : vector<12x256xf32>
    %140 = arith.select %136, %134, %139 : vector<12x256xi1>, vector<12x256xf32>
    %c0_82 = arith.constant 0 : index
    %c0_83 = arith.constant 0 : index
    %c0_84 = arith.constant 0 : index
    %141 = vector.load %arg16[%c0_82, %c0_83, %c0_84] : memref<1x12x256xf32, #tpu.memory_space<vmem>>, vector<1x12x256xf32>
    %142 = vector.shape_cast %141 : vector<1x12x256xf32> to vector<12x256xf32>
    %143 = vector.shape_cast %140 : vector<12x256xf32> to vector<1x12x256xf32>
    tpu.vector_store %arg16[%c0_82, %c0_83, %c0_84], %143 {strides = array<i32>} : memref<1x12x256xf32, #tpu.memory_space<vmem>>, vector<1x12x256xf32>,
    return
  }
  func.func @transform_0(%arg0: i32) -> i32 {
    %c0_i32 = arith.constant 0 : i32
    %c0_i32_0 = arith.constant 0 : i32
    return %c0_i32 : i32
  }
  func.func @transform_1(%arg0: i32) -> (i32, i32, i32) {
    %c0_i32 = arith.constant 0 : i32
    %c0_i32_0 = arith.constant 0 : i32
    %c0_i32_1 = arith.constant 0 : i32
    return %arg0, %c0_i32, %c0_i32_0 : i32, i32, i32
  }
  func.func @transform_2(%arg0: i32) -> (i32, i32, i32, i32) {
    %c0_i32 = arith.constant 0 : i32
    %c0_i32_0 = arith.constant 0 : i32
    %c0_i32_1 = arith.constant 0 : i32
    %c0_i32_2 = arith.constant 0 : i32
    return %arg0, %c0_i32, %c0_i32_0, %c0_i32_1 : i32, i32, i32, i32
  }
  func.func @transform_3(%arg0: i32) -> (i32, i32, i32) {
    %c0_i32 = arith.constant 0 : i32
    %c0_i32_0 = arith.constant 0 : i32
    %c0_i32_1 = arith.constant 0 : i32
    return %arg0, %c0_i32, %c0_i32_0 : i32, i32, i32
  }
  func.func @transform_4(%arg0: i32) -> (i32, i32) {
    %c0_i32 = arith.constant 0 : i32
    %c0_i32_0 = arith.constant 0 : i32
    %c0_i32_1 = arith.constant 0 : i32
    return %c0_i32, %c0_i32_0 : i32, i32
  }
  func.func @transform_5(%arg0: i32) -> (i32, i32) {
    %c0_i32 = arith.constant 0 : i32
    %c0_i32_0 = arith.constant 0 : i32
    %c0_i32_1 = arith.constant 0 : i32
    return %c0_i32, %c0_i32_0 : i32, i32
  }
  func.func @transform_6(%arg0: i32) -> (i32, i32) {
    %c0_i32 = arith.constant 0 : i32
    %c0_i32_0 = arith.constant 0 : i32
    %c0_i32_1 = arith.constant 0 : i32
    return %c0_i32, %c0_i32_0 : i32, i32
  }
  func.func @transform_7(%arg0: i32) -> (i32, i32) {
    %c0_i32 = arith.constant 0 : i32
    %c0_i32_0 = arith.constant 0 : i32
    %c0_i32_1 = arith.constant 0 : i32
    return %c0_i32, %c0_i32_0 : i32, i32
  }
  func.func @transform_8(%arg0: i32) -> (i32, i32) {
    %c0_i32 = arith.constant 0 : i32
    %c0_i32_0 = arith.constant 0 : i32
    %c0_i32_1 = arith.constant 0 : i32
    return %c0_i32, %c0_i32_0 : i32, i32
  }
  func.func @transform_9(%arg0: i32) -> (i32, i32) {
    %c0_i32 = arith.constant 0 : i32
    %c0_i32_0 = arith.constant 0 : i32
    %c0_i32_1 = arith.constant 0 : i32
    return %c0_i32, %c0_i32_0 : i32, i32
  }
  func.func @transform_10(%arg0: i32) -> (i32, i32) {
    %c0_i32 = arith.constant 0 : i32
    %c0_i32_0 = arith.constant 0 : i32
    %c0_i32_1 = arith.constant 0 : i32
    return %c0_i32, %c0_i32_0 : i32, i32
  }
  func.func @transform_11(%arg0: i32) -> (i32, i32) {
    %c0_i32 = arith.constant 0 : i32
    %c0_i32_0 = arith.constant 0 : i32
    %c0_i32_1 = arith.constant 0 : i32
    return %c0_i32, %c0_i32_0 : i32, i32
  }
  func.func @transform_12(%arg0: i32) -> (i32, i32, i32) {
    %c0_i32 = arith.constant 0 : i32
    %c0_i32_0 = arith.constant 0 : i32
    %c0_i32_1 = arith.constant 0 : i32
    %c0_i32_2 = arith.constant 0 : i32
    return %c0_i32, %c0_i32_0, %c0_i32_1 : i32, i32, i32
  }
  func.func @transform_13(%arg0: i32) -> (i32, i32) {
    %c0_i32 = arith.constant 0 : i32
    %c0_i32_0 = arith.constant 0 : i32
    %c0_i32_1 = arith.constant 0 : i32
    return %c0_i32, %c0_i32_0 : i32, i32
  }
  func.func @transform_14(%arg0: i32) -> (i32, i32) {
    %c0_i32 = arith.constant 0 : i32
    %c0_i32_0 = arith.constant 0 : i32
    %c0_i32_1 = arith.constant 0 : i32
    return %c0_i32, %c0_i32_0 : i32, i32
  }
  func.func @transform_15(%arg0: i32) -> (i32, i32, i32) {
    %c0_i32 = arith.constant 0 : i32
    %c0_i32_0 = arith.constant 0 : i32
    %c0_i32_1 = arith.constant 0 : i32
    return %arg0, %c0_i32, %c0_i32_0 : i32, i32, i32
  }
}

</mosaic_0001>

<bundles_post_ra>
// kernel: _lambda_.3
= control target key start
LH: loop header
LB: loop body
LE: loop exit
PB: predicated region body
PF: predicated region fallthrough
CT: control target
= control target key end

     0   :  { %s1446_s20 = smov 0   ;;  %s1576_s0 = inlined_call_operand.<no memory space> [shape: f32[1], index: 0, kind: input, shape index: {}]   ;;  %s1577_s1 = inlined_call_operand.vmem [shape: f32[2,32,1], index: 1, kind: input, shape index: {}]   ;;  %s1578_s2 = inlined_call_operand.vmem [shape: f32[2,1,4,256], index: 2, kind: input, shape index: {}]   ;;  %s1579_s3 = inlined_call_operand.vmem [shape: f32[2,1,256], index: 3, kind: input, shape index: {}]   ;;  %s1580_s4 = inlined_call_operand.vmem [shape: f32[32,32], index: 4, kind: input, shape index: {}]   ;;  %s1581_s5 = inlined_call_operand.vmem [shape: f32[32,1], index: 5, kind: input, shape index: {}, may-alias: {5,8}]   ;;  %s1582_s6 = inlined_call_operand.vmem [shape: f32[32,1], index: 6, kind: input, shape index: {}, may-alias: {6,9}]   ;;  %s1583_s7 = inlined_call_operand.vmem [shape: f32[32,32], index: 7, kind: input, shape index: {}]   ;;  %s1584_s8 = inlined_call_operand.vmem [shape: f32[32,1], index: 8, kind: input, shape index: {}, may-alias: {5,8}]   ;;  %s1585_s9 = inlined_call_operand.vmem [shape: f32[32,1], index: 9, kind: input, shape index: {}, may-alias: {6,9}]   ;;  %s1586_s10 = inlined_call_operand.vmem [shape: f32[4,32], index: 10, kind: input, shape index: {}]   ;;  %s1587_s11 = inlined_call_operand.vmem [shape: f32[4,1], index: 11, kind: input, shape index: {}]   ;;  %s1588_s12 = inlined_call_operand.vmem [shape: f32[1,8,4], index: 12, kind: input, shape index: {}]   ;;  %s1589_s13 = inlined_call_operand.vmem [shape: f32[8,1], index: 13, kind: input, shape index: {}]   ;;  %s1590_s14 = inlined_call_operand.vmem [shape: f32[8,1], index: 14, kind: input, shape index: {}]   ;;  %s1591_s15 = inlined_call_operand.vmem [shape: f32[2,8,256], index: 15, kind: output, shape index: {}]  }
   0x1   :  { %20 = sst [smem:[#allocation2]] %s1576_s0 }
   0x2 LB: > { %s1209_s21 = sadd.s32 4294967295, %s1356_s20   ;;  %p1213_p0 = scmp.ge.s32.totalorder %s1356_s20, 1  ;;  %s1356_s20 = sphi %s1446_s20, %s26_s20  }
   0x3   : > { %p457_p1 = scmp.lt.s32.totalorder %s1356_s20, 3 }
   0x5   : > { %p458_p2 = pnand %p1213_p0, %p457_p1 }
   0x6   : > { %p514_p3 = scmp.lt.s32.totalorder (!%p458_p2), %s1209_s21, 1  ;;  %v568_v0 = vld [vmem:[%s1580_s4] sm:$0xff] (!%p458_p2)  ;;  %vm572_vm0 = vcmask (!%p458_p2), 261120   ;;  %vm541_vm1 = vcmask (!%p458_p2), 7168   ;;  %v569_v35 = vld [vmem:[%s1580_s4 + $0x8] sm:$0xff] (!%p458_p2)  ;;  %v570_v36 = vld [vmem:[%s1580_s4 + $0x10] sm:$0xff] (!%p458_p2) }
   0x7   : > { %461 = sbr.rel (%p458_p2) target bundleno = 1124 (0x464), region = 80  ;;  %1271 = vmatprep.mubr.msk.f32.mxu0 (!%p458_p2), %vm572_vm0, %v568_v0  ;;  %v571_v37 = vld [vmem:[%s1580_s4 + $0x18] sm:$0xff] (!%p458_p2)  ;;  %v698_v38 = vld [vmem:[%s1583_s7] sm:$0xff] (!%p458_p2)  ;;  %v675_v40 = vld [vmem:[%s1581_s5 + $0x8] sm:$0xff] (!%p458_p2)  ;;  %vm1359_vm8 = vmmov (!%p458_p2), 0   ;;  %vm912_vm13 = vcmask (!%p458_p2), 1043456  }
   0x8   : > { %1285 = vmatprep.mubr.msk.f32.mxu1 (!%p458_p2), %vm572_vm0, %v698_v38  ;;  %v674_v43 = vld [vmem:[%s1581_s5] sm:$0xff] (!%p458_p2)  ;;  %v687_v45 = vld [vmem:[%s1582_s6 + $0x8] sm:$0xff] (!%p458_p2)  ;;  %v677_v50 = vld [vmem:[%s1581_s5 + $0x18] sm:$0xff] (!%p458_p2)  ;;  %vm908_vm14 = vcmask (!%p458_p2), 31744   ;;  %s1091_s16 = sld [smem:[#allocation2]] (!%p458_p2) }
   0x9   : > { %v686_v47 = vld [vmem:[%s1582_s6] sm:$0xff] (!%p458_p2)  ;;  %v676_v53 = vld [vmem:[%s1581_s5 + $0x10] sm:$0xff] (!%p458_p2)  ;;  %v689_v55 = vld [vmem:[%s1582_s6 + $0x18] sm:$0xff] (!%p458_p2) }
   0xa   : > { %v688_v59 = vld [vmem:[%s1582_s6 + $0x10] sm:$0xff] (!%p458_p2) }
   0xe   : > { %s1593_s21 = smov (!%p514_p3, %s1209_s21), 1 }
   0xf   : > { %s1237_s0 = sshll.u32 %s1593_s21, 5  ;;  %s1238_s27 = sshll.u32 %s1593_s21, 3 }
  0x10   : > { %s518_s26 = scalar_lea.vmem %s1577_s1, %s1237_s0  ;;  %s523_s30 = scalar_lea.vmem %s1578_s2, %s1238_s27 }
  0x11   : > { %v533_v1 = vld [vmem:[%s518_s26] sm:$0xff]  ;;  %v534_v2 = vld [vmem:[%s518_s26 + $0x8] sm:$0xff]  ;;  %v535_v3 = vld [vmem:[%s518_s26 + $0x10] sm:$0xff]  ;;  %s1218_s17 = sshll.u32 %s1593_s21, 1  ;;  %s1239_s23 = sshll.u32 %s1593_s21, 4 }
  0x12   : > { %v536_v4 = vld [vmem:[%s518_s26 + $0x18] sm:$0xff]  ;;  %v537_v5 = vmul.f32 %v533_v1, %v533_v1  ;;  %v538_v6 = vmul.f32 %v534_v2, %v534_v2  ;;  %v539_v7 = vmul.f32 %v535_v3, %v535_v3  ;;  %s527_s22 = scalar_lea.vmem %s1579_s3, %s1218_s17  ;;  %s532_s25 = scalar_lea.vmem %s1591_s15, %s1239_s23 }
  0x13   : > { %v540_v8 = vmul.f32 %v536_v4, %v536_v4 }
  0x14   : > { %v542_v9 = vsel %vm541_vm1, %v537_v5, 0.0  ;;  %v543_v10 = vsel %vm541_vm1, %v538_v6, 0.0  ;;  %v545_v11 = vsel %vm541_vm1, %v539_v7, 0.0  ;;  %v699_v5 = vld [vmem:[%s1583_s7 + $0x8] sm:$0xff]  ;;  %v700_v6 = vld [vmem:[%s1583_s7 + $0x10] sm:$0xff]  ;;  %v701_v7 = vld [vmem:[%s1583_s7 + $0x18] sm:$0xff] }
  0x15   : > { %v544_v12 = vadd.f32 %v543_v10, %v542_v9  ;;  %v547_v13 = vsel %vm541_vm1, %v540_v8, 0.0  ;;  %v1358_v8 = vmov 0.0|0.0   ;;  %v1360_v9 = vmov 0.0  }
  0x17   : > { %v546_v14 = vadd.f32 %v545_v11, %v544_v12  ;;  %v804_v11 = vld [vmem:[%s1584_s8 + $0x8] sm:$0xff] }
  0x19   : > { %v548_v15 = vadd.f32 %v547_v13, %v546_v14  ;;  %v803_v14 = vld [vmem:[%s1584_s8] sm:$0xff] }
  0x1b   : > { %v549_v16 = vrot.slane %v548_v15, 4 }
  0x1d   : > { %v550_v17 = vadd.f32 %v549_v16, %v548_v15  ;;  %v816_v15 = vld [vmem:[%s1585_s9 + $0x8] sm:$0xff] }
  0x1f   : > { %v551_v18 = vrot.slane %v550_v17, 2 }
  0x21   : > { %v552_v19 = vadd.f32 %v551_v18, %v550_v17  ;;  %v815_v18 = vld [vmem:[%s1585_s9] sm:$0xff] }
  0x23   : > { %v553_v20 = vrot.slane %v552_v19, 1 }
  0x25   : > { %v554_v21 = vadd.f32 %v553_v20, %v552_v19 }
  0x27   : > { %1344 = vrsqrt.f32 %v554_v21  ;;  %vm557_vm2 = vcmp.eq.f32.partialorder %v554_v21, inf  ;;  %v560_v23 = vand.u32 2147483648, %v554_v21  ;;  %vm559_vm3 = vcmp.eq.f32.partialorder %v554_v21, 0.0 }
  0x31   : > { %v1345_v22 = vpop.eup %1344 }
  0x32   : > { %v556_v24 = vmul.f32 %v1345_v22, %v554_v21 }
  0x34   : > { %v558_v25 = vsel %vm557_vm2, %v554_v21, %v556_v24  ;;  %v806_v21 = vld [vmem:[%s1584_s8 + $0x18] sm:$0xff] }
  0x35   : > { %v561_v26 = vsel %vm559_vm3, %v560_v23, %v558_v25  ;;  %v805_v25 = vld [vmem:[%s1584_s8 + $0x10] sm:$0xff] }
  0x36   : > { %v562_v27 = vmax.f32 %v561_v26, 1e-12 }
  0x38   : > { %1346 = vrcp.f32 %v562_v27  ;;  %v818_v27 = vld [vmem:[%s1585_s9 + $0x18] sm:$0xff] }
  0x42   : > { %v1347_v28 = vpop.eup %1346 }
  0x43   : > { %v564_v29 = vmul.f32 %v1347_v28, %v533_v1  ;;  %v565_v30 = vmul.f32 %v1347_v28, %v534_v2  ;;  %v566_v31 = vmul.f32 %v1347_v28, %v535_v3  ;;  %v567_v32 = vmul.f32 %v1347_v28, %v536_v4 }
  0x45   : > { %v1307_v33 = vpack.c.bf16 %v565_v30, %v564_v29  ;;  %v1311_v34 = vpack.c.bf16 %v567_v32, %v566_v31  ;;  %v817_v31 = vld [vmem:[%s1585_s9 + $0x10] sm:$0xff] }
  0x47   : > { %1308 = vmatprep.subr.bf16.mxu0 %v1307_v33 }
  0x48   : > { %1310 = vmatpush3.bf16.msra.mxu0 %v1307_v33 }
  0x49   : > { %1312 = vmatprep.subr.bf16.mxu0 %v1311_v34 }
  0x4c   : > { %1314 = vmatpush3.bf16.msra.mxu0 %v1311_v34 }
  0x4d   : > { %1323 = vmatprep.subr.bf16.mxu0 %v1358_v8 }
  0x4f   : > { %1272 = vmatmul.mubr.msk.f32.vlgmr.msra.gmra.mrb[0].mxu0 %vm572_vm0, %v569_v35 }
  0x50   : > { %1274 = vmatprep.mubr.msk.f32.mxu0 %vm572_vm0, %v570_v36 }
  0x53   : > { %1275 = vmatmul.mubr.msk.f32.gmra.mrb[2].mxu0 %vm572_vm0, %v571_v37 }
  0x54   : > { %1299 = vmatprep.mubr.msk.f32.mxu0 %vm1359_vm8, %v1360_v9 }
 0x122   : > { %v1273_v39 = vpop.f32.mrb[0].mxu0 }
 0x123   : > { %v671_v41 = vmul.f32 0.17677669, %v1273_v39  ;;  %v651_v42 = vpop.f32.mrb[1].mxu0 }
 0x124   : > { %v670_v44 = vmul.f32 0.17677669, %v651_v42 }
 0x125   : > { %v679_v46 = vadd.f32 %v675_v40, %v671_v41  ;;  %v827_v40 = vld [vmem:[%s1586_s10] sm:$0xf]  ;;  %v1361_v41 = vmov 0  }
 0x126   : > { %v678_v48 = vadd.f32 %v674_v43, %v670_v44  ;;  %v1276_v49 = vpop.f32.mrb[2].mxu0  ;;  %1342 = vset.pattern.permute.xlu0 %v1361_v41  ;;  %1343 = vset.pattern.permute.xlu1 %v1361_v41  ;;  %v902_v43 = vld [vmem:[%s1587_s11] sm:$0xf] }
 0x127   : > { %v673_v51 = vmul.f32 0.17677669, %v1276_v49  ;;  %v661_v52 = vpop.f32.mrb[3].mxu0  ;;  %vm683_vm4 = vcmp.ge.f32.partialorder %v679_v46, 0.0  ;;  %v691_v54 = vmul.f32 %v687_v45, %v679_v46 }
 0x128   : > { %v672_v56 = vmul.f32 0.17677669, %v661_v52  ;;  %vm682_vm5 = vcmp.ge.f32.partialorder %v678_v48, 0.0  ;;  %v690_v57 = vmul.f32 %v686_v47, %v678_v48  ;;  %v1362_v52 = vmov 839922192  }
 0x129   : > { %v681_v58 = vadd.f32 %v677_v50, %v673_v51  ;;  %v695_v60 = vsel %vm683_vm4, %v679_v46, %v691_v54  ;;  %v904_v46 = vld [vmem:[%s1588_s12] sm:$0xff]  ;;  %v998_v54 = vlaneseq }
 0x12a   : > { %v680_v61 = vadd.f32 %v676_v53, %v672_v56  ;;  %v694_v62 = vsel %vm682_vm5, %v678_v48, %v690_v57  ;;  %v905_v48 = vmul.f32 %v904_v46, %v904_v46  ;;  %v1108_v50 = vld [vmem:[%s1589_s13] sm:$0xff]  ;;  %v996_v53 = vunpack.c.l.s4 %v1362_v52 }
 0x12b   : > { %vm685_vm6 = vcmp.ge.f32.partialorder %v681_v58, 0.0  ;;  %v693_v63 = vmul.f32 %v689_v55, %v681_v58  ;;  %v1315_v0 = vpack.c.bf16 %v695_v60, %v694_v62  ;;  %1111 = vperm.xlu1 %1343, %v1108_v50   ;;  %v1118_v51 = vld [vmem:[%s1590_s14] sm:$0xff]  ;;  %v999_v56 = vshrl.u32 %v998_v54, 7 }
 0x12c   : > { %vm684_vm7 = vcmp.ge.f32.partialorder %v680_v61, 0.0  ;;  %v692_v1 = vmul.f32 %v688_v59, %v680_v61  ;;  %v997_v55 = vunpack.c.0.s8 %v996_v53 }
 0x12d   : > { %1316 = vmatprep.subr.bf16.mxu1 %v1315_v0  ;;  %v697_v2 = vsel %vm685_vm6, %v681_v58, %v693_v63  ;;  %v990_v58 = vld [vmem:[%s523_s30] sm:$0xff] }
 0x12e   : > { %1318 = vmatpush3.bf16.msra.mxu1 %v1315_v0  ;;  %v696_v3 = vsel %vm684_vm7, %v680_v61, %v692_v1  ;;  %v1000_v57 = vsub.s32 %v997_v55, %v999_v56 }
 0x12f   : > { %v1319_v4 = vpack.c.bf16 %v697_v2, %v696_v3  ;;  %1121 = vperm.xlu1 %1343, %v1118_v51  }
 0x131   : > { %1320 = vmatprep.subr.bf16.mxu1 %v1319_v4 }
 0x132   : > { %1322 = vmatpush3.bf16.msra.mxu1 %v1319_v4 }
 0x133   : > { %1302 = vmatprep.subr.mxu1 %v1360_v9 }
 0x135   : > { %1286 = vmatmul.mubr.msk.f32.vlgmr.msra.gmra.mrb[0].mxu1 %vm572_vm0, %v699_v5 }
 0x136   : > { %1288 = vmatprep.mubr.msk.f32.mxu1 %vm572_vm0, %v700_v6 }
 0x139   : > { %1289 = vmatmul.mubr.msk.f32.gmra.mrb[2].mxu1 %vm572_vm0, %v701_v7  ;;  %v1092_v7 = vld [vmem:[%s527_s22] sm:$0x3] }
 0x13a   : > { %1304 = vmatprep.mubr.msk.f32.mxu1 %vm1359_vm8, %v1360_v9 }
 0x208   : > { %v1287_v10 = vpop.f32.mrb[0].mxu1 }
 0x209   : > { %v800_v12 = vmul.f32 0.17677669, %v1287_v10  ;;  %v780_v13 = vpop.f32.mrb[1].mxu1  ;;  %v1098_v10 = vsub.s32 0, %v999_v56 }
 0x20a   : > { %v799_v16 = vmul.f32 0.17677669, %v780_v13 }
 0x20b   : > { %v808_v17 = vadd.f32 %v804_v11, %v800_v12  ;;  %v1102_v11 = vsub.s32 1, %v999_v56 }
 0x20c   : > { %v807_v19 = vadd.f32 %v803_v14, %v799_v16  ;;  %v1290_v20 = vpop.f32.mrb[2].mxu1 }
 0x20d   : > { %vm812_vm9 = vcmp.ge.f32.partialorder %v808_v17, 0.0  ;;  %v820_v22 = vmul.f32 %v816_v15, %v808_v17  ;;  %v802_v23 = vmul.f32 0.17677669, %v1290_v20  ;;  %v790_v24 = vpop.f32.mrb[3].mxu1  ;;  %v1112_v15 = vpop.permute.xlu1 %1111 }
 0x20e   : > { %vm811_vm10 = vcmp.ge.f32.partialorder %v807_v19, 0.0  ;;  %v819_v26 = vmul.f32 %v815_v18, %v807_v19  ;;  %v801_v28 = vmul.f32 0.17677669, %v790_v24 }
 0x20f   : > { %v824_v29 = vsel %vm812_vm9, %v808_v17, %v820_v22  ;;  %v810_v30 = vadd.f32 %v806_v21, %v802_v23 }
 0x210   : > { %v823_v32 = vsel %vm811_vm10, %v807_v19, %v819_v26  ;;  %v809_v33 = vadd.f32 %v805_v25, %v801_v28 }
 0x211   : > { %vm814_vm11 = vcmp.ge.f32.partialorder %v810_v30, 0.0  ;;  %v822_v34 = vmul.f32 %v818_v27, %v810_v30  ;;  %v1324_v35 = vpack.c.bf16 %v824_v29, %v823_v32  ;;  %v1122_v22 = vpop.permute.xlu1 %1121 }
 0x212   : > { %vm813_vm12 = vcmp.ge.f32.partialorder %v809_v33, 0.0  ;;  %v821_v36 = vmul.f32 %v817_v31, %v809_v33 }
 0x213   : > { %v826_v37 = vsel %vm814_vm11, %v810_v30, %v822_v34  ;;  %1325 = vmatpush3.bf16.msra.mxu0 %v1324_v35 }
 0x214   : > { %v825_v38 = vsel %vm813_vm12, %v809_v33, %v821_v36  ;;  %1326 = vmatprep.subr.bf16.mxu0 %v1358_v8  ;;  %v1093_v8 = vstv %s1091_s16 }
 0x215   : > { %v1327_v39 = vpack.c.bf16 %v826_v37, %v825_v38 }
 0x217   : > { %1328 = vmatpush3.bf16.msra.mxu0 %v1327_v39 }
 0x21a   : > { %1300 = vmatmul.mubr.msk.f32.vlgmr.msra.gmra.mrb[4].mxu0 %vm572_vm0, %v827_v40 }
 0x21b   : > { %1077 = vmatprep.mubr.f32.mxu0 %v1360_v9  ;;  %v1094_v9 = vmul.f32 %v1093_v8, %v1092_v7 }
 0x21d   : > { %v1099_v12 = vrot.slane %v1094_v9, %v1098_v10  ;;  %v1103_v13 = vrot.slane %v1094_v9, %v1102_v11 }
 0x2ed   : > { %v897_v42 = vpop.f32.mrb[4].mxu0 }
 0x2ee   : > { %v901_v44 = vmul.f32 0.17677669, %v897_v42  ;;  %v1301_v45 = vpop.f32.mrb[5].mxu0 }
 0x2f0   : > { %v903_v47 = vadd.f32 %v902_v43, %v901_v44 }
 0x2f2   : > { %993 = vperm.xlu0 %1342, %v903_v47   ;;  %v907_v49 = vmul.f32 %v903_v47, %v903_v47 }
 0x2f4   : > { %1303 = vmatpush3.msk.msra.mxu1 %vm912_vm13, %v907_v49 }
 0x2f5   : > { %1305 = vmatmul.mubr.msk.f32.vlgmr.msra.gmra.mrb[4].mxu1 %vm908_vm14, %v905_v48 }
 0x371   : > { %v994_v59 = vpop.permute.xlu0 %993 }
 0x372   : > { %v1001_v60 = vrot.slane %v994_v59, %v1000_v57 }
 0x374   : > { %v1003_v61 = vmul.f32 %v1001_v60, %v990_v58 }
 0x376   : > { %v1005_v62 = vcombine.high %v1003_v61, %v1003_v61 }
 0x378   : > { %1232 = vmatprep.subr.msk.mxu0 %vm912_vm13, %v1005_v62 }
 0x379   : > { %1233 = vmatpush1.msk.msra.mxu0 %vm912_vm13, %v1003_v61 }
 0x37a   : > { %1234 = vmatmul.mubr.msk.f32.vlgmr.msra.gmra.mrb[6].mxu0 %vm908_vm14, %v904_v46 }
 0x3c8   : > { %v982_v63 = vpop.f32.mrb[4].mxu1 }
 0x3c9   : > { %v986_v0 = vmul.f32 0.25, %v982_v63  ;;  %v1306_v1 = vpop.f32.mrb[5].mxu1 }
 0x3cb   : > { %v987_v2 = vadd.f32 1e-08, %v986_v0 }
 0x3cd   : > { %1348 = vrsqrt.f32 %v987_v2 }
 0x3d7   : > { %v1349_v3 = vpop.eup %1348 }
 0x3d8   : > { %v989_v4 = vmul.f32 0.5, %v1349_v3 }
 0x3da   : > { %1086 = vperm.xlu0 %1342, %v989_v4  }
 0x44d   : > { %v1079_v5 = vpop.f32.mrb[6].mxu0 }
 0x44e   : > { %v1081_v6 = vpop.f32.mrb[7].mxu0 }
 0x459   : > { %v1087_v14 = vpop.permute.xlu0 %1086 }
 0x45a   : > { %v1089_v16 = vmul.f32 %v1087_v14, %v1079_v5  ;;  %v1090_v17 = vmul.f32 %v1087_v14, %v1081_v6 }
 0x45c   : > { %v1106_v18 = vadd.f32 %v1099_v12, %v1089_v16  ;;  %v1107_v19 = vadd.f32 %v1103_v13, %v1090_v17 }
 0x45e   : > { %v1114_v20 = vadd.f32 %v1112_v15, %v1106_v18  ;;  %v1115_v21 = vadd.f32 %v1112_v15, %v1107_v19 }
 0x460   : > { %vm1116_vm15 = vcmp.ge.f32.partialorder %v1114_v20, 0.0  ;;  %vm1117_vm0 = vcmp.ge.f32.partialorder %v1115_v21, 0.0  ;;  %v1124_v23 = vmul.f32 %v1122_v22, %v1114_v20  ;;  %v1125_v24 = vmul.f32 %v1122_v22, %v1115_v21 }
 0x462   : > { %v1126_v25 = vsel %vm1116_vm15, %v1114_v20, %v1124_v23  ;;  %v1127_v26 = vsel %vm1117_vm0, %v1115_v21, %v1125_v24 }
 0x463   : > { %1128 = vst [vmem:[%s532_s25] sm:$0xff] %v1126_v25  ;;  %1129 = vst [vmem:[%s532_s25 + $0x8] sm:$0xff] %v1127_v26 }
 0x464 PF: > { %s26_s20 = sadd.s32 1, %s1356_s20  }
 0x465   : > { %p23_p4 = scmp.ge.s32.totalorder %s26_s20, 4  }
 0x467   :  { %25 = sbr.rel (!%p23_p4) target bundleno = 2 (0x2), region = 116 }

// kernel: _lambda_.4
= control target key start
LH: loop header
LB: loop body
LE: loop exit
PB: predicated region body
PF: predicated region fallthrough
CT: control target
= control target key end

     0   :  { %s2143_s20 = smov 0   ;;  %s2390_s0 = inlined_call_operand.<no memory space> [shape: f32[1], index: 0, kind: input, shape index: {}]   ;;  %s2391_s1 = inlined_call_operand.vmem [shape: f32[2,32,1], index: 1, kind: input, shape index: {}]   ;;  %s2392_s2 = inlined_call_operand.vmem [shape: f32[2,9,8,256], index: 2, kind: input, shape index: {}]   ;;  %s2393_s3 = inlined_call_operand.vmem [shape: f32[2,1,256], index: 3, kind: input, shape index: {}]   ;;  %s2394_s4 = inlined_call_operand.vmem [shape: f32[32,32], index: 4, kind: input, shape index: {}]   ;;  %s2395_s5 = inlined_call_operand.vmem [shape: f32[32,1], index: 5, kind: input, shape index: {}, may-alias: {5,8}]   ;;  %s2396_s6 = inlined_call_operand.vmem [shape: f32[32,1], index: 6, kind: input, shape index: {}, may-alias: {6,9}]   ;;  %s2397_s7 = inlined_call_operand.vmem [shape: f32[32,32], index: 7, kind: input, shape index: {}]   ;;  %s2398_s8 = inlined_call_operand.vmem [shape: f32[32,1], index: 8, kind: input, shape index: {}, may-alias: {5,8}]   ;;  %s2399_s9 = inlined_call_operand.vmem [shape: f32[32,1], index: 9, kind: input, shape index: {}, may-alias: {6,9}]   ;;  %s2400_s10 = inlined_call_operand.vmem [shape: f32[8,32], index: 10, kind: input, shape index: {}]   ;;  %s2401_s11 = inlined_call_operand.vmem [shape: f32[8,1], index: 11, kind: input, shape index: {}]   ;;  %s2402_s12 = inlined_call_operand.vmem [shape: f32[9,8,8], index: 12, kind: input, shape index: {}]   ;;  %s2403_s13 = inlined_call_operand.vmem [shape: f32[8,1], index: 13, kind: input, shape index: {}]   ;;  %s2404_s14 = inlined_call_operand.vmem [shape: f32[8,1], index: 14, kind: input, shape index: {}]   ;;  %s2405_s15 = inlined_call_operand.vmem [shape: f32[2,8,256], index: 15, kind: output, shape index: {}]  }
   0x1   :  { %20 = sst [smem:[#allocation2]] %s2390_s0 }
   0x2 LB: > { %s1872_s21 = sadd.s32 4294967295, %s2054_s20   ;;  %p1876_p0 = scmp.ge.s32.totalorder %s2054_s20, 1  ;;  %s2054_s20 = sphi %s2143_s20, %s26_s20  }
   0x3   : > { %p457_p1 = scmp.lt.s32.totalorder %s2054_s20, 3 }
   0x5   : > { %p458_p2 = pnand %p1876_p0, %p457_p1 }
   0x6   : > { %p514_p3 = scmp.lt.s32.totalorder (!%p458_p2), %s1872_s21, 1  ;;  %v568_v0 = vld [vmem:[%s2394_s4] sm:$0xff] (!%p458_p2)  ;;  %vm572_vm0 = vcmask (!%p458_p2), 261120   ;;  %vm541_vm1 = vcmask (!%p458_p2), 7168   ;;  %v569_v35 = vld [vmem:[%s2394_s4 + $0x8] sm:$0xff] (!%p458_p2)  ;;  %v570_v36 = vld [vmem:[%s2394_s4 + $0x10] sm:$0xff] (!%p458_p2) }
   0x7   : > { %461 = sbr.rel (%p458_p2) target bundleno = 1167 (0x48f), region = 80  ;;  %1953 = vmatprep.mubr.msk.f32.mxu1 (!%p458_p2), %vm572_vm0, %v568_v0  ;;  %v571_v37 = vld [vmem:[%s2394_s4 + $0x18] sm:$0xff] (!%p458_p2)  ;;  %v698_v38 = vld [vmem:[%s2397_s7] sm:$0xff] (!%p458_p2)  ;;  %v675_v40 = vld [vmem:[%s2395_s5 + $0x8] sm:$0xff] (!%p458_p2)  ;;  %vm2057_vm8 = vmmov (!%p458_p2), 0   ;;  %vm922_vm13 = vcmask (!%p458_p2), 64512  }
   0x8   : > { %v674_v43 = vld [vmem:[%s2395_s5] sm:$0xff] (!%p458_p2)  ;;  %v687_v44 = vld [vmem:[%s2396_s6 + $0x8] sm:$0xff] (!%p458_p2)  ;;  %v677_v50 = vld [vmem:[%s2395_s5 + $0x18] sm:$0xff] (!%p458_p2)  ;;  %s1754_s18 = sld [smem:[#allocation2]] (!%p458_p2) }
   0x9   : > { %v686_v47 = vld [vmem:[%s2396_s6] sm:$0xff] (!%p458_p2)  ;;  %v676_v54 = vld [vmem:[%s2395_s5 + $0x10] sm:$0xff] (!%p458_p2)  ;;  %v689_v56 = vld [vmem:[%s2396_s6 + $0x18] sm:$0xff] (!%p458_p2) }
   0xa   : > { %v688_v59 = vld [vmem:[%s2396_s6 + $0x10] sm:$0xff] (!%p458_p2) }
   0xe   : > { %s2407_s21 = smov (!%p514_p3, %s1872_s21), 1 }
   0xf   : > { %s1920_s0 = sshll.u32 %s2407_s21, 5  ;;  %s2027_s29 = smul.u32 144, %s2407_s21 }
  0x10   : > { %s518_s26 = scalar_lea.vmem %s2391_s1, %s1920_s0  ;;  %s1880_s19 = sshll.u32 %s2407_s21, 1 }
  0x11   : > { %v533_v1 = vld [vmem:[%s518_s26] sm:$0xff]  ;;  %v534_v2 = vld [vmem:[%s518_s26 + $0x8] sm:$0xff]  ;;  %v535_v3 = vld [vmem:[%s518_s26 + $0x10] sm:$0xff]  ;;  %s2334_s17 = scalar_lea.vmem %s2392_s2, %s2027_s29  ;;  %s527_s0 = scalar_lea.vmem %s2393_s3, %s1880_s19 }
  0x12   : > { %v536_v4 = vld [vmem:[%s518_s26 + $0x18] sm:$0xff]  ;;  %v537_v5 = vmul.f32 %v533_v1, %v533_v1  ;;  %v538_v6 = vmul.f32 %v534_v2, %v534_v2  ;;  %v539_v7 = vmul.f32 %v535_v3, %v535_v3  ;;  %s1921_s24 = sshll.u32 %s2407_s21, 4 }
  0x13   : > { %v540_v8 = vmul.f32 %v536_v4, %v536_v4  ;;  %s532_s27 = scalar_lea.vmem %s2405_s15, %s1921_s24 }
  0x14   : > { %v542_v9 = vsel %vm541_vm1, %v537_v5, 0.0  ;;  %v543_v10 = vsel %vm541_vm1, %v538_v6, 0.0  ;;  %v545_v11 = vsel %vm541_vm1, %v539_v7, 0.0  ;;  %v699_v5 = vld [vmem:[%s2397_s7 + $0x8] sm:$0xff]  ;;  %v700_v6 = vld [vmem:[%s2397_s7 + $0x10] sm:$0xff]  ;;  %v701_v7 = vld [vmem:[%s2397_s7 + $0x18] sm:$0xff] }
  0x15   : > { %v544_v12 = vadd.f32 %v543_v10, %v542_v9  ;;  %v547_v13 = vsel %vm541_vm1, %v540_v8, 0.0  ;;  %v2056_v8 = vmov 0.0|0.0   ;;  %v2058_v9 = vmov 0.0  }
  0x16   : > { %1173 = vmatprep.mubr.f32.mxu0 %v2058_v9 }
  0x17   : > { %v546_v14 = vadd.f32 %v545_v11, %v544_v12  ;;  %v804_v11 = vld [vmem:[%s2398_s8 + $0x8] sm:$0xff] }
  0x19   : > { %v548_v15 = vadd.f32 %v547_v13, %v546_v14  ;;  %v803_v14 = vld [vmem:[%s2398_s8] sm:$0xff] }
  0x1b   : > { %v549_v16 = vrot.slane %v548_v15, 4 }
  0x1d   : > { %v550_v17 = vadd.f32 %v549_v16, %v548_v15  ;;  %v816_v15 = vld [vmem:[%s2399_s9 + $0x8] sm:$0xff] }
  0x1f   : > { %v551_v18 = vrot.slane %v550_v17, 2 }
  0x21   : > { %v552_v19 = vadd.f32 %v551_v18, %v550_v17  ;;  %v815_v18 = vld [vmem:[%s2399_s9] sm:$0xff] }
  0x23   : > { %v553_v20 = vrot.slane %v552_v19, 1 }
  0x25   : > { %v554_v21 = vadd.f32 %v553_v20, %v552_v19 }
  0x27   : > { %2042 = vrsqrt.f32 %v554_v21  ;;  %vm557_vm2 = vcmp.eq.f32.partialorder %v554_v21, inf  ;;  %v560_v23 = vand.u32 2147483648, %v554_v21  ;;  %vm559_vm3 = vcmp.eq.f32.partialorder %v554_v21, 0.0 }
  0x31   : > { %v2043_v22 = vpop.eup %2042 }
  0x32   : > { %v556_v24 = vmul.f32 %v2043_v22, %v554_v21 }
  0x34   : > { %v558_v25 = vsel %vm557_vm2, %v554_v21, %v556_v24  ;;  %v806_v21 = vld [vmem:[%s2398_s8 + $0x18] sm:$0xff] }
  0x35   : > { %v561_v26 = vsel %vm559_vm3, %v560_v23, %v558_v25  ;;  %v805_v25 = vld [vmem:[%s2398_s8 + $0x10] sm:$0xff] }
  0x36   : > { %v562_v27 = vmax.f32 %v561_v26, 1e-12 }
  0x38   : > { %2044 = vrcp.f32 %v562_v27  ;;  %v818_v27 = vld [vmem:[%s2399_s9 + $0x18] sm:$0xff] }
  0x42   : > { %v2045_v28 = vpop.eup %2044 }
  0x43   : > { %v564_v29 = vmul.f32 %v2045_v28, %v533_v1  ;;  %v565_v30 = vmul.f32 %v2045_v28, %v534_v2  ;;  %v566_v31 = vmul.f32 %v2045_v28, %v535_v3  ;;  %v567_v32 = vmul.f32 %v2045_v28, %v536_v4 }
  0x45   : > { %v1989_v33 = vpack.c.bf16 %v565_v30, %v564_v29  ;;  %v1993_v34 = vpack.c.bf16 %v567_v32, %v566_v31  ;;  %v817_v31 = vld [vmem:[%s2399_s9 + $0x10] sm:$0xff] }
  0x47   : > { %1990 = vmatprep.subr.bf16.mxu1 %v1989_v33 }
  0x48   : > { %1992 = vmatpush3.bf16.msra.mxu1 %v1989_v33 }
  0x49   : > { %1994 = vmatprep.subr.bf16.mxu1 %v1993_v34 }
  0x4c   : > { %1996 = vmatpush3.bf16.msra.mxu1 %v1993_v34 }
  0x4f   : > { %1954 = vmatmul.mubr.msk.f32.vlgmr.msra.gmra.mrb[0].mxu1 %vm572_vm0, %v569_v35 }
  0x50   : > { %1956 = vmatprep.mubr.msk.f32.mxu1 %vm572_vm0, %v570_v36 }
  0x53   : > { %1957 = vmatmul.mubr.msk.f32.gmra.mrb[2].mxu1 %vm572_vm0, %v571_v37 }
  0x54   : > { %1967 = vmatprep.mubr.msk.f32.mxu1 %vm572_vm0, %v698_v38 }
 0x122   : > { %v1955_v39 = vpop.f32.mrb[0].mxu1 }
 0x123   : > { %v671_v41 = vmul.f32 0.17677669, %v1955_v39  ;;  %v651_v42 = vpop.f32.mrb[1].mxu1 }
 0x124   : > { %v670_v45 = vmul.f32 0.17677669, %v651_v42  ;;  %v2250_v42 = vld [vmem:[%s2402_s12] sm:$0xff] }
 0x125   : > { %v679_v46 = vadd.f32 %v675_v40, %v671_v41  ;;  %v827_v40 = vld [vmem:[%s2400_s10] sm:$0xff]  ;;  %v2059_v41 = vmov 0  }
 0x126   : > { %v678_v48 = vadd.f32 %v674_v43, %v670_v45  ;;  %v1958_v49 = vpop.f32.mrb[2].mxu1  ;;  %2040 = vset.pattern.permute.xlu0 %v2059_v41  ;;  %2041 = vset.pattern.permute.xlu1 %v2059_v41  ;;  %v2255_v43 = vld [vmem:[%s2402_s12 + $0x8] sm:$0xff]  ;;  %v1903_v41 = vld [vmem:[%s2334_s17 + $0x40] sm:$0xff] }
 0x127   : > { %vm683_vm4 = vcmp.ge.f32.partialorder %v679_v46, 0.0  ;;  %v691_v51 = vmul.f32 %v687_v44, %v679_v46  ;;  %v673_v52 = vmul.f32 0.17677669, %v1958_v49  ;;  %v661_v53 = vpop.f32.mrb[3].mxu1  ;;  %v913_v44 = vmul.f32 %v2250_v42, %v2250_v42 }
 0x128   : > { %vm682_vm5 = vcmp.ge.f32.partialorder %v678_v48, 0.0  ;;  %v690_v55 = vmul.f32 %v686_v47, %v678_v48  ;;  %v672_v57 = vmul.f32 0.17677669, %v661_v53  ;;  %v914_v45 = vmul.f32 %v2255_v43, %v2255_v43 }
 0x129   : > { %v681_v58 = vadd.f32 %v677_v50, %v673_v52  ;;  %v695_v60 = vsel %vm683_vm4, %v679_v46, %v691_v51  ;;  %v2264_v46 = vld [vmem:[%s2402_s12 + $0x10] sm:$0xff]  ;;  %v2273_v50 = vld [vmem:[%s2402_s12 + $0x18] sm:$0xff] }
 0x12a   : > { %v680_v61 = vadd.f32 %v676_v54, %v672_v57  ;;  %v694_v62 = vsel %vm682_vm5, %v678_v48, %v690_v55  ;;  %v915_v47 = vmul.f32 %v2264_v46, %v2264_v46  ;;  %v923_v48 = vsel %vm922_vm13, %v913_v44, 0.0  ;;  %v2281_v54 = vld [vmem:[%s2402_s12 + $0x20] sm:$0xff] }
 0x12b   : > { %vm685_vm6 = vcmp.ge.f32.partialorder %v681_v58, 0.0  ;;  %v693_v63 = vmul.f32 %v689_v56, %v681_v58  ;;  %v1997_v0 = vpack.c.bf16 %v695_v60, %v694_v62  ;;  %v924_v49 = vsel %vm922_vm13, %v914_v45, 0.0  ;;  %v2297_v62 = vld [vmem:[%s2402_s12 + $0x30] sm:$0xff] }
 0x12c   : > { %vm684_vm7 = vcmp.ge.f32.partialorder %v680_v61, 0.0  ;;  %v692_v1 = vmul.f32 %v688_v59, %v680_v61  ;;  %v925_v51 = vadd.f32 %v924_v49, %v923_v48  ;;  %v916_v52 = vmul.f32 %v2273_v50, %v2273_v50  ;;  %v1906_v45 = vld [vmem:[%s2334_s17 + $0x50] sm:$0xff]  ;;  %v1909_v49 = vld [vmem:[%s2334_s17 + $0x60] sm:$0xff] }
 0x12d   : > { %1998 = vmatprep.subr.bf16.mxu1 %v1997_v0  ;;  %v697_v2 = vsel %vm685_vm6, %v681_v58, %v693_v63  ;;  %v926_v53 = vsel %vm922_vm13, %v915_v47, 0.0  ;;  %v917_v56 = vmul.f32 %v2281_v54, %v2281_v54  ;;  %v2289_v58 = vld [vmem:[%s2402_s12 + $0x28] sm:$0xff] }
 0x12e   : > { %2000 = vmatpush3.bf16.msra.mxu1 %v1997_v0  ;;  %v696_v3 = vsel %vm684_vm7, %v680_v61, %v692_v1  ;;  %v927_v55 = vadd.f32 %v926_v53, %v925_v51  ;;  %v928_v57 = vsel %vm922_vm13, %v916_v52, 0.0  ;;  %v918_v60 = vmul.f32 %v2289_v58, %v2289_v58  ;;  %v1912_v53 = vld [vmem:[%s2334_s17 + $0x70] sm:$0xff] }
 0x12f   : > { %v2001_v4 = vpack.c.bf16 %v697_v2, %v696_v3  ;;  %v930_v61 = vsel %vm922_vm13, %v917_v56, 0.0  ;;  %v919_v0 = vmul.f32 %v2297_v62, %v2297_v62  ;;  %v2305_v2 = vld [vmem:[%s2402_s12 + $0x38] sm:$0xff] }
 0x130   : > { %v929_v59 = vadd.f32 %v928_v57, %v927_v55  ;;  %v932_v1 = vsel %vm922_vm13, %v918_v60, 0.0  ;;  %v1916_v55 = vld [vmem:[%s2334_s17 + $0x88] sm:$0xff]  ;;  %v1915_v57 = vld [vmem:[%s2334_s17 + $0x80] sm:$0xff] }
 0x131   : > { %2002 = vmatprep.subr.bf16.mxu1 %v2001_v4 }
 0x132   : > { %2004 = vmatpush3.bf16.msra.mxu1 %v2001_v4  ;;  %v931_v63 = vadd.f32 %v930_v61, %v929_v59  ;;  %v920_v4 = vmul.f32 %v2305_v2, %v2305_v2 }
 0x133   : > { %2005 = vmatprep.subr.bf16.mxu1 %v2056_v8 }
 0x134   : > { %v933_v3 = vadd.f32 %v932_v1, %v931_v63 }
 0x135   : > { %1968 = vmatmul.mubr.msk.f32.vlgmr.msra.gmra.mrb[4].mxu1 %vm572_vm0, %v699_v5  ;;  %v934_v5 = vsel %vm922_vm13, %v919_v0, 0.0 }
 0x136   : > { %1970 = vmatprep.mubr.msk.f32.mxu1 %vm572_vm0, %v700_v6  ;;  %v2313_v6 = vld [vmem:[%s2402_s12 + $0x40] sm:$0xff] }
 0x139   : > { %1971 = vmatmul.mubr.msk.f32.gmra.mrb[6].mxu1 %vm572_vm0, %v701_v7  ;;  %v935_v7 = vadd.f32 %v934_v5, %v933_v3  ;;  %v1755_v5 = vld [vmem:[%s527_s0] sm:$0x3] }
 0x13a   : > { %1981 = vmatprep.mubr.msk.f32.mxu1 %vm2057_vm8, %v2058_v9 }
 0x208   : > { %v1969_v10 = vpop.f32.mrb[4].mxu1 }
 0x209   : > { %v800_v12 = vmul.f32 0.17677669, %v1969_v10  ;;  %v780_v13 = vpop.f32.mrb[5].mxu1  ;;  %v936_v10 = vsel %vm922_vm13, %v920_v4, 0.0  ;;  %v1759_v4 = vlaneseq }
 0x20a   : > { %v799_v16 = vmul.f32 0.17677669, %v780_v13  ;;  %v937_v13 = vadd.f32 %v936_v10, %v935_v7 }
 0x20b   : > { %v808_v17 = vadd.f32 %v804_v11, %v800_v12  ;;  %v902_v12 = vld [vmem:[%s2401_s11] sm:$0xff] }
 0x20c   : > { %v807_v19 = vadd.f32 %v803_v14, %v799_v16  ;;  %v1972_v20 = vpop.f32.mrb[6].mxu1 }
 0x20d   : > { %vm812_vm9 = vcmp.ge.f32.partialorder %v808_v17, 0.0  ;;  %v820_v22 = vmul.f32 %v816_v15, %v808_v17  ;;  %v802_v23 = vmul.f32 0.17677669, %v1972_v20  ;;  %v790_v24 = vpop.f32.mrb[7].mxu1  ;;  %v1771_v20 = vld [vmem:[%s2403_s13] sm:$0xff] }
 0x20e   : > { %vm811_vm10 = vcmp.ge.f32.partialorder %v807_v19, 0.0  ;;  %v819_v26 = vmul.f32 %v815_v18, %v807_v19  ;;  %v801_v28 = vmul.f32 0.17677669, %v790_v24  ;;  %1774 = vperm.xlu1 %2041, %v1771_v20   ;;  %v1893_v24 = vld [vmem:[%s2334_s17 + $0x10] sm:$0xff] }
 0x20f   : > { %v824_v29 = vsel %vm812_vm9, %v808_v17, %v820_v22  ;;  %v810_v30 = vadd.f32 %v806_v21, %v802_v23  ;;  %v1781_v21 = vld [vmem:[%s2404_s14] sm:$0xff]  ;;  %v1894_v22 = vld [vmem:[%s2334_s17 + $0x18] sm:$0xff]  ;;  %v1019_v23 = vld [vmem:[%s2334_s17 + $0x8] sm:$0xff] }
 0x210   : > { %v823_v32 = vsel %vm811_vm10, %v807_v19, %v819_v26  ;;  %v809_v33 = vadd.f32 %v805_v25, %v801_v28  ;;  %v1018_v25 = vld [vmem:[%s2334_s17] sm:$0xff] }
 0x211   : > { %vm814_vm11 = vcmp.ge.f32.partialorder %v810_v30, 0.0  ;;  %v822_v34 = vmul.f32 %v818_v27, %v810_v30  ;;  %v2006_v35 = vpack.c.bf16 %v824_v29, %v823_v32  ;;  %v1898_v27 = vld [vmem:[%s2334_s17 + $0x28] sm:$0xff]  ;;  %v1897_v32 = vld [vmem:[%s2334_s17 + $0x20] sm:$0xff] }
 0x212   : > { %vm813_vm12 = vcmp.ge.f32.partialorder %v809_v33, 0.0  ;;  %v821_v36 = vmul.f32 %v817_v31, %v809_v33  ;;  %1784 = vperm.xlu1 %2041, %v1781_v21  }
 0x213   : > { %v826_v37 = vsel %vm814_vm11, %v810_v30, %v822_v34  ;;  %2007 = vmatpush3.bf16.msra.mxu1 %v2006_v35 }
 0x214   : > { %v825_v38 = vsel %vm813_vm12, %v809_v33, %v821_v36  ;;  %2008 = vmatprep.subr.bf16.mxu1 %v2056_v8  ;;  %v921_v8 = vmul.f32 %v2313_v6, %v2313_v6  ;;  %v1901_v33 = vld [vmem:[%s2334_s17 + $0x38] sm:$0xff] }
 0x215   : > { %v2009_v39 = vpack.c.bf16 %v826_v37, %v825_v38  ;;  %v1900_v37 = vld [vmem:[%s2334_s17 + $0x30] sm:$0xff]  ;;  %v1904_v38 = vld [vmem:[%s2334_s17 + $0x48] sm:$0xff] }
 0x216   : > { %v938_v16 = vsel %vm922_vm13, %v921_v8, 0.0 }
 0x217   : > { %2010 = vmatpush3.bf16.msra.mxu1 %v2009_v39  ;;  %v939_v18 = vadd.f32 %v938_v16, %v937_v13 }
 0x218   : > { %1984 = vmatprep.subr.mxu1 %v2058_v9 }
 0x21a   : > { %1982 = vmatmul.mubr.msk.f32.vlgmr.msra.gmra.mrb[8].mxu1 %vm572_vm0, %v827_v40 }
 0x21b   : > { %1986 = vmatprep.mubr.msk.f32.mxu1 %vm2057_vm8, %v2058_v9 }
 0x28d   : > { %v1775_v16 = vpop.permute.xlu1 %1774 }
 0x2ed   : > { %v897_v11 = vpop.f32.mrb[8].mxu1 }
 0x2ee   : > { %v901_v14 = vmul.f32 0.17677669, %v897_v11  ;;  %v1983_v15 = vpop.f32.mrb[9].mxu1 }
 0x2f0   : > { %v903_v17 = vadd.f32 %v902_v12, %v901_v14 }
 0x2f2   : > { %1022 = vperm.xlu0 %2040, %v903_v17   ;;  %v940_v19 = vmul.f32 %v903_v17, %v903_v17 }
 0x2f4   : > { %1985 = vmatpush3.msra.mxu1 %v940_v19 }
 0x2f5   : > { %1987 = vmatmul.mubr.msk.f32.vlgmr.msra.gmra.mrb[10].mxu1 %vm922_vm13, %v939_v18 }
 0x2f6   : > { %1099 = vmatprep.mubr.f32.mxu1 %v2058_v9 }
 0x371   : > { %v1023_v26 = vpop.permute.xlu0 %1022 }
 0x372   : > { %v1031_v28 = vmul.f32 %v1894_v22, %v1023_v26  ;;  %v1026_v29 = vmul.f32 %v1023_v26, %v1019_v23  ;;  %v1030_v30 = vmul.f32 %v1893_v24, %v1023_v26  ;;  %v1025_v31 = vmul.f32 %v1023_v26, %v1018_v25  ;;  %v1785_v24 = vpop.permute.xlu1 %1784 }
 0x373   : > { %v1184_v34 = vmul.f32 %v1898_v27, %v1023_v26  ;;  %v1183_v35 = vmul.f32 %v1897_v32, %v1023_v26  ;;  %v1265_v36 = vmul.f32 %v1901_v33, %v1023_v26  ;;  %v1264_v39 = vmul.f32 %v1900_v37, %v1023_v26 }
 0x374   : > { %1035 = vmatprep.subr.mxu1 %v1031_v28  ;;  %1109 = vmatprep.subr.mxu0 %v1026_v29  ;;  %v1346_v40 = vmul.f32 %v1904_v38, %v1023_v26  ;;  %v1345_v44 = vmul.f32 %v1903_v41, %v1023_v26  ;;  %v1426_v47 = vmul.f32 %v1906_v45, %v1023_v26 }
 0x375   : > { %1036 = vmatpush1.msra.mxu1 %v1030_v30  ;;  %1110 = vmatpush1.msra.mxu0 %v1025_v31  ;;  %v1507_v51 = vmul.f32 %v1909_v49, %v1023_v26  ;;  %v1670_v56 = vmul.f32 %v1916_v55, %v1023_v26  ;;  %v1669_v59 = vmul.f32 %v1915_v57, %v1023_v26 }
 0x376   : > { %1896 = vmatmul.mubr.msk.f32.vlgmr.msra.gmra.mrb[0].mxu0 %vm922_vm13, %v2250_v42  ;;  %1188 = vmatprep.subr.mxu0 %v1184_v34  ;;  %v1907_v42 = vld [vmem:[%s2334_s17 + $0x58] sm:$0xff] }
 0x377   : > { %1189 = vmatpush1.msra.mxu0 %v1183_v35  ;;  %1252 = vmatprep.mubr.f32.mxu0 %v2058_v9 }
 0x378   : > { %1269 = vmatprep.subr.mxu0 %v1265_v36  ;;  %1895 = vmatmul.mubr.msk.f32.vlgmr.msra.gmra.mrb[12].mxu1 %vm922_vm13, %v2255_v43  ;;  %v1427_v43 = vmul.f32 %v1907_v42, %v1023_v26 }
 0x37e   : > { %1899 = vmatmul.mubr.msk.f32.vlgmr.msra.gmra.mrb[0].mxu0 %vm922_vm13, %v2264_v46  ;;  %v1910_v46 = vld [vmem:[%s2334_s17 + $0x68] sm:$0xff] }
 0x37f   : > { %1270 = vmatpush1.msra.mxu0 %v1264_v39  ;;  %1333 = vmatprep.mubr.f32.mxu0 %v2058_v9  ;;  %v1508_v48 = vmul.f32 %v1910_v46, %v1023_v26 }
 0x380   : > { %1350 = vmatprep.subr.mxu0 %v1346_v40 }
 0x386   : > { %1902 = vmatmul.mubr.msk.f32.vlgmr.msra.gmra.mrb[0].mxu0 %vm922_vm13, %v2273_v50  ;;  %v1913_v50 = vld [vmem:[%s2334_s17 + $0x78] sm:$0xff] }
 0x387   : > { %1351 = vmatpush1.msra.mxu0 %v1345_v44  ;;  %1414 = vmatprep.mubr.f32.mxu0 %v2058_v9  ;;  %v1589_v52 = vmul.f32 %v1913_v50, %v1023_v26 }
 0x388   : > { %1431 = vmatprep.subr.mxu0 %v1427_v43 }
 0x38e   : > { %1905 = vmatmul.mubr.msk.f32.vlgmr.msra.gmra.mrb[0].mxu0 %vm922_vm13, %v2281_v54  ;;  %v1588_v54 = vmul.f32 %v1912_v53, %v1023_v26 }
 0x38f   : > { %1432 = vmatpush1.msra.mxu0 %v1426_v47  ;;  %1495 = vmatprep.mubr.f32.mxu0 %v2058_v9 }
 0x390   : > { %1512 = vmatprep.subr.mxu0 %v1508_v48 }
 0x396   : > { %1908 = vmatmul.mubr.msk.f32.vlgmr.msra.gmra.mrb[0].mxu0 %vm922_vm13, %v2289_v58 }
 0x397   : > { %1513 = vmatpush1.msra.mxu0 %v1507_v51  ;;  %1576 = vmatprep.mubr.f32.mxu0 %v2058_v9 }
 0x398   : > { %1593 = vmatprep.subr.mxu0 %v1589_v52 }
 0x39e   : > { %1911 = vmatmul.mubr.msk.f32.vlgmr.msra.gmra.mrb[0].mxu0 %vm922_vm13, %v2297_v62 }
 0x39f   : > { %1594 = vmatpush1.msra.mxu0 %v1588_v54  ;;  %1657 = vmatprep.mubr.f32.mxu0 %v2058_v9 }
 0x3a0   : > { %1674 = vmatprep.subr.mxu0 %v1670_v56 }
 0x3a6   : > { %1914 = vmatmul.mubr.msk.f32.vlgmr.msra.gmra.mrb[0].mxu0 %vm922_vm13, %v2305_v2  ;;  %v1756_v2 = vstv %s1754_s18 }
 0x3a7   : > { %1675 = vmatpush1.msra.mxu0 %v1669_v59  ;;  %1738 = vmatprep.mubr.f32.mxu0 %v2058_v9  ;;  %v1760_v9 = vshrl.u32 %v1759_v4, 7  ;;  %v1757_v7 = vmul.f32 %v1756_v2, %v1755_v5 }
 0x3a9   : > { %v1765_v8 = vsub.s32 1, %v1760_v9 }
 0x3ab   : > { %v1766_v17 = vrot.slane %v1757_v7, %v1765_v8 }
 0x3ae   : > { %1917 = vmatmul.mubr.msk.f32.vlgmr.msra.gmra.mrb[0].mxu0 %vm922_vm13, %v2313_v6  ;;  %v1761_v6 = vsub.s32 0, %v1760_v9 }
 0x3b0   : > { %v1762_v13 = vrot.slane %v1757_v7, %v1761_v6 }
 0x3c8   : > { %v1010_v58 = vpop.f32.mrb[10].mxu1 }
 0x3c9   : > { %v1014_v60 = vmul.f32 0.013888889, %v1010_v58  ;;  %v1988_v61 = vpop.f32.mrb[11].mxu1 }
 0x3cb   : > { %v1015_v62 = vadd.f32 1e-08, %v1014_v60 }
 0x3cd   : > { %2046 = vrsqrt.f32 %v1015_v62 }
 0x3d7   : > { %v2047_v63 = vpop.eup %2046 }
 0x3d8   : > { %v1017_v0 = vmul.f32 0.11785113, %v2047_v63 }
 0x3da   : > { %1749 = vperm.xlu0 %2040, %v1017_v0  }
 0x44b   : > { %v1101_v1 = vpop.f32.mrb[12].mxu1 }
 0x44c   : > { %v1103_v3 = vpop.f32.mrb[13].mxu1 }
 0x459   : > { %v1750_v14 = vpop.permute.xlu0 %1749 }
 0x481   : > { %v1740_v10 = vpop.f32.mrb[0].mxu0 }
 0x482   : > { %v2011_v11 = vadd.f32 %v1740_v10, %v1101_v1  ;;  %v1742_v12 = vpop.f32.mrb[1].mxu0 }
 0x483   : > { %v2012_v15 = vadd.f32 %v1742_v12, %v1103_v3 }
 0x484   : > { %v1752_v18 = vmul.f32 %v2011_v11, %v1750_v14 }
 0x485   : > { %v1753_v19 = vmul.f32 %v2012_v15, %v1750_v14 }
 0x486   : > { %v1769_v20 = vadd.f32 %v1762_v13, %v1752_v18 }
 0x487   : > { %v1770_v21 = vadd.f32 %v1766_v17, %v1753_v19 }
 0x488   : > { %v1777_v22 = vadd.f32 %v1775_v16, %v1769_v20 }
 0x489   : > { %v1778_v23 = vadd.f32 %v1775_v16, %v1770_v21 }
 0x48a   : > { %vm1779_vm14 = vcmp.ge.f32.partialorder %v1777_v22, 0.0  ;;  %v1787_v25 = vmul.f32 %v1785_v24, %v1777_v22 }
 0x48b   : > { %vm1780_vm15 = vcmp.ge.f32.partialorder %v1778_v23, 0.0  ;;  %v1788_v26 = vmul.f32 %v1785_v24, %v1778_v23 }
 0x48c   : > { %v1789_v27 = vsel %vm1779_vm14, %v1777_v22, %v1787_v25 }
 0x48d   : > { %v1790_v28 = vsel %vm1780_vm15, %v1778_v23, %v1788_v26  ;;  %1791 = vst [vmem:[%s532_s27] sm:$0xff] %v1789_v27 }
 0x48e   : > { %1792 = vst [vmem:[%s532_s27 + $0x8] sm:$0xff] %v1790_v28 }
 0x48f PF: > { %s26_s20 = sadd.s32 1, %s2054_s20  }
 0x490   : > { %p23_p4 = scmp.ge.s32.totalorder %s26_s20, 4  }
 0x492   :  { %25 = sbr.rel (!%p23_p4) target bundleno = 2 (0x2), region = 124 }

// kernel: _lambda_.5
= control target key start
LH: loop header
LB: loop body
LE: loop exit
PB: predicated region body
PF: predicated region fallthrough
CT: control target
= control target key end

     0   :  { %s2348_s20 = smov 0   ;;  %s2720_s0 = inlined_call_operand.<no memory space> [shape: f32[1], index: 0, kind: input, shape index: {}]   ;;  %s2721_s1 = inlined_call_operand.vmem [shape: f32[2,32,1], index: 1, kind: input, shape index: {}]   ;;  %s2722_s2 = inlined_call_operand.vmem [shape: f32[2,9,8,256], index: 2, kind: input, shape index: {}]   ;;  %s2723_s3 = inlined_call_operand.vmem [shape: f32[2,1,256], index: 3, kind: input, shape index: {}]   ;;  %s2724_s4 = inlined_call_operand.vmem [shape: f32[32,32], index: 4, kind: input, shape index: {}]   ;;  %s2725_s5 = inlined_call_operand.vmem [shape: f32[32,1], index: 5, kind: input, shape index: {}, may-alias: {5,8}]   ;;  %s2726_s6 = inlined_call_operand.vmem [shape: f32[32,1], index: 6, kind: input, shape index: {}, may-alias: {6,9}]   ;;  %s2727_s7 = inlined_call_operand.vmem [shape: f32[32,32], index: 7, kind: input, shape index: {}]   ;;  %s2728_s8 = inlined_call_operand.vmem [shape: f32[32,1], index: 8, kind: input, shape index: {}, may-alias: {5,8}]   ;;  %s2729_s9 = inlined_call_operand.vmem [shape: f32[32,1], index: 9, kind: input, shape index: {}, may-alias: {6,9}]   ;;  %s2730_s10 = inlined_call_operand.vmem [shape: f32[8,32], index: 10, kind: input, shape index: {}]   ;;  %s2731_s11 = inlined_call_operand.vmem [shape: f32[8,1], index: 11, kind: input, shape index: {}]   ;;  %s2732_s12 = inlined_call_operand.vmem [shape: f32[9,12,8], index: 12, kind: input, shape index: {}]   ;;  %s2733_s13 = inlined_call_operand.vmem [shape: f32[12,1], index: 13, kind: input, shape index: {}]   ;;  %s2734_s14 = inlined_call_operand.vmem [shape: f32[12,1], index: 14, kind: input, shape index: {}]   ;;  %s2735_s15 = inlined_call_operand.vmem [shape: f32[2,12,256], index: 15, kind: output, shape index: {}]  }
   0x1   :  { %20 = sst [smem:[#allocation2]] %s2720_s0 }
   0x2 LB: > { %s2046_s21 = sadd.s32 4294967295, %s2259_s20   ;;  %p2050_p0 = scmp.ge.s32.totalorder %s2259_s20, 1  ;;  %s2259_s20 = sphi %s2348_s20, %s26_s20  }
   0x3   : > { %p457_p1 = scmp.lt.s32.totalorder %s2259_s20, 3 }
   0x5   : > { %p458_p2 = pnand %p2050_p0, %p457_p1 }
   0x6   : > { %p514_p3 = scmp.lt.s32.totalorder (!%p458_p2), %s2046_s21, 1  ;;  %v568_v0 = vld [vmem:[%s2724_s4] sm:$0xff] (!%p458_p2)  ;;  %vm572_vm0 = vcmask (!%p458_p2), 261120   ;;  %vm541_vm1 = vcmask (!%p458_p2), 7168   ;;  %v569_v35 = vld [vmem:[%s2724_s4 + $0x8] sm:$0xff] (!%p458_p2)  ;;  %v570_v36 = vld [vmem:[%s2724_s4 + $0x10] sm:$0xff] (!%p458_p2) }
   0x7   : > { %461 = sbr.rel (%p458_p2) target bundleno = 1164 (0x48c), region = 80  ;;  %2138 = vmatprep.mubr.msk.f32.mxu1 (!%p458_p2), %vm572_vm0, %v568_v0  ;;  %v571_v37 = vld [vmem:[%s2724_s4 + $0x18] sm:$0xff] (!%p458_p2)  ;;  %v698_v38 = vld [vmem:[%s2727_s7] sm:$0xff] (!%p458_p2)  ;;  %v675_v40 = vld [vmem:[%s2725_s5 + $0x8] sm:$0xff] (!%p458_p2)  ;;  %vm2262_vm8 = vmmov (!%p458_p2), 0   ;;  %vm940_vm13 = vcmask (!%p458_p2), 64512  }
   0x8   : > { %v674_v43 = vld [vmem:[%s2725_s5] sm:$0xff] (!%p458_p2)  ;;  %v687_v44 = vld [vmem:[%s2726_s6 + $0x8] sm:$0xff] (!%p458_p2)  ;;  %v677_v50 = vld [vmem:[%s2725_s5 + $0x18] sm:$0xff] (!%p458_p2)  ;;  %vm958_vm14 = vcmask (!%p458_p2), 60416   ;;  %s1904_s19 = sld [smem:[#allocation2]] (!%p458_p2) }
   0x9   : > { %v686_v47 = vld [vmem:[%s2726_s6] sm:$0xff] (!%p458_p2)  ;;  %v676_v54 = vld [vmem:[%s2725_s5 + $0x10] sm:$0xff] (!%p458_p2)  ;;  %v689_v56 = vld [vmem:[%s2726_s6 + $0x18] sm:$0xff] (!%p458_p2) }
   0xa   : > { %v688_v59 = vld [vmem:[%s2726_s6 + $0x10] sm:$0xff] (!%p458_p2) }
   0xe   : > { %s2737_s21 = smov (!%p514_p3, %s2046_s21), 1 }
   0xf   : > { %s2104_s0 = sshll.u32 %s2737_s21, 5  ;;  %s2230_s22 = smul.u32 144, %s2737_s21 }
  0x10   : > { %s518_s26 = scalar_lea.vmem %s2721_s1, %s2104_s0  ;;  %s532_s28 = scalar_lea.vmem %s2735_s15, %s2104_s0 }
  0x11   : > { %v533_v1 = vld [vmem:[%s518_s26] sm:$0xff]  ;;  %v534_v2 = vld [vmem:[%s518_s26 + $0x8] sm:$0xff]  ;;  %v535_v3 = vld [vmem:[%s518_s26 + $0x10] sm:$0xff]  ;;  %s2604_s25 = scalar_lea.vmem %s2722_s2, %s2230_s22  ;;  %s2054_s22 = sshll.u32 %s2737_s21, 1 }
  0x12   : > { %v536_v4 = vld [vmem:[%s518_s26 + $0x18] sm:$0xff]  ;;  %v537_v5 = vmul.f32 %v533_v1, %v533_v1  ;;  %v538_v6 = vmul.f32 %v534_v2, %v534_v2  ;;  %v539_v7 = vmul.f32 %v535_v3, %v535_v3 }
  0x13   : > { %v540_v8 = vmul.f32 %v536_v4, %v536_v4 }
  0x14   : > { %v542_v9 = vsel %vm541_vm1, %v537_v5, 0.0  ;;  %v543_v10 = vsel %vm541_vm1, %v538_v6, 0.0  ;;  %v545_v11 = vsel %vm541_vm1, %v539_v7, 0.0  ;;  %v699_v5 = vld [vmem:[%s2727_s7 + $0x8] sm:$0xff]  ;;  %v700_v6 = vld [vmem:[%s2727_s7 + $0x10] sm:$0xff]  ;;  %v701_v7 = vld [vmem:[%s2727_s7 + $0x18] sm:$0xff] }
  0x15   : > { %v544_v12 = vadd.f32 %v543_v10, %v542_v9  ;;  %v547_v13 = vsel %vm541_vm1, %v540_v8, 0.0  ;;  %v2261_v8 = vmov 0.0|0.0   ;;  %v2263_v9 = vmov 0.0  }
  0x16   : > { %1321 = vmatprep.mubr.f32.mxu0 %v2263_v9 }
  0x17   : > { %v546_v14 = vadd.f32 %v545_v11, %v544_v12  ;;  %v804_v11 = vld [vmem:[%s2728_s8 + $0x8] sm:$0xff] }
  0x19   : > { %v548_v15 = vadd.f32 %v547_v13, %v546_v14  ;;  %v803_v14 = vld [vmem:[%s2728_s8] sm:$0xff] }
  0x1b   : > { %v549_v16 = vrot.slane %v548_v15, 4 }
  0x1d   : > { %v550_v17 = vadd.f32 %v549_v16, %v548_v15  ;;  %v816_v15 = vld [vmem:[%s2729_s9 + $0x8] sm:$0xff] }
  0x1f   : > { %v551_v18 = vrot.slane %v550_v17, 2 }
  0x21   : > { %v552_v19 = vadd.f32 %v551_v18, %v550_v17  ;;  %v815_v18 = vld [vmem:[%s2729_s9] sm:$0xff] }
  0x23   : > { %v553_v20 = vrot.slane %v552_v19, 1 }
  0x25   : > { %v554_v21 = vadd.f32 %v553_v20, %v552_v19 }
  0x27   : > { %2245 = vrsqrt.f32 %v554_v21  ;;  %vm557_vm2 = vcmp.eq.f32.partialorder %v554_v21, inf  ;;  %v560_v23 = vand.u32 2147483648, %v554_v21  ;;  %vm559_vm3 = vcmp.eq.f32.partialorder %v554_v21, 0.0 }
  0x31   : > { %v2246_v22 = vpop.eup %2245 }
  0x32   : > { %v556_v24 = vmul.f32 %v2246_v22, %v554_v21 }
  0x34   : > { %v558_v25 = vsel %vm557_vm2, %v554_v21, %v556_v24  ;;  %v806_v21 = vld [vmem:[%s2728_s8 + $0x18] sm:$0xff] }
  0x35   : > { %v561_v26 = vsel %vm559_vm3, %v560_v23, %v558_v25  ;;  %v805_v25 = vld [vmem:[%s2728_s8 + $0x10] sm:$0xff] }
  0x36   : > { %v562_v27 = vmax.f32 %v561_v26, 1e-12 }
  0x38   : > { %2247 = vrcp.f32 %v562_v27  ;;  %v818_v27 = vld [vmem:[%s2729_s9 + $0x18] sm:$0xff] }
  0x42   : > { %v2248_v28 = vpop.eup %2247 }
  0x43   : > { %v564_v29 = vmul.f32 %v2248_v28, %v533_v1  ;;  %v565_v30 = vmul.f32 %v2248_v28, %v534_v2  ;;  %v566_v31 = vmul.f32 %v2248_v28, %v535_v3  ;;  %v567_v32 = vmul.f32 %v2248_v28, %v536_v4 }
  0x45   : > { %v2174_v33 = vpack.c.bf16 %v565_v30, %v564_v29  ;;  %v2178_v34 = vpack.c.bf16 %v567_v32, %v566_v31  ;;  %v817_v31 = vld [vmem:[%s2729_s9 + $0x10] sm:$0xff] }
  0x47   : > { %2175 = vmatprep.subr.bf16.mxu1 %v2174_v33 }
  0x48   : > { %2177 = vmatpush3.bf16.msra.mxu1 %v2174_v33 }
  0x49   : > { %2179 = vmatprep.subr.bf16.mxu1 %v2178_v34 }
  0x4c   : > { %2181 = vmatpush3.bf16.msra.mxu1 %v2178_v34 }
  0x4f   : > { %2139 = vmatmul.mubr.msk.f32.vlgmr.msra.gmra.mrb[0].mxu1 %vm572_vm0, %v569_v35 }
  0x50   : > { %2141 = vmatprep.mubr.msk.f32.mxu1 %vm572_vm0, %v570_v36 }
  0x53   : > { %2142 = vmatmul.mubr.msk.f32.gmra.mrb[2].mxu1 %vm572_vm0, %v571_v37 }
  0x54   : > { %2152 = vmatprep.mubr.msk.f32.mxu1 %vm572_vm0, %v698_v38 }
 0x122   : > { %v2140_v39 = vpop.f32.mrb[0].mxu1 }
 0x123   : > { %v671_v41 = vmul.f32 0.17677669, %v2140_v39  ;;  %v651_v42 = vpop.f32.mrb[1].mxu1 }
 0x124   : > { %v670_v45 = vmul.f32 0.17677669, %v651_v42  ;;  %v2458_v42 = vld [vmem:[%s2732_s12 + $0x10] sm:$0xff] }
 0x125   : > { %v679_v46 = vadd.f32 %v675_v40, %v671_v41  ;;  %v827_v40 = vld [vmem:[%s2730_s10] sm:$0xff] }
 0x126   : > { %v678_v48 = vadd.f32 %v674_v43, %v670_v45  ;;  %v2143_v49 = vpop.f32.mrb[2].mxu1  ;;  %v2453_v41 = vld [vmem:[%s2732_s12] sm:$0xff] }
 0x127   : > { %vm683_vm4 = vcmp.ge.f32.partialorder %v679_v46, 0.0  ;;  %v691_v51 = vmul.f32 %v687_v44, %v679_v46  ;;  %v673_v52 = vmul.f32 0.17677669, %v2143_v49  ;;  %v661_v53 = vpop.f32.mrb[3].mxu1  ;;  %v922_v43 = vmul.f32 %v2453_v41, %v2453_v41  ;;  %v2467_v45 = vld [vmem:[%s2732_s12 + $0x20] sm:$0xff]  ;;  %v2476_v49 = vld [vmem:[%s2732_s12 + $0x30] sm:$0xff] }
 0x128   : > { %vm682_vm5 = vcmp.ge.f32.partialorder %v678_v48, 0.0  ;;  %v690_v55 = vmul.f32 %v686_v47, %v678_v48  ;;  %v672_v57 = vmul.f32 0.17677669, %v661_v53  ;;  %v924_v44 = vmul.f32 %v2458_v42, %v2458_v42  ;;  %v2484_v53 = vld [vmem:[%s2732_s12 + $0x40] sm:$0xff] }
 0x129   : > { %v681_v58 = vadd.f32 %v677_v50, %v673_v52  ;;  %v695_v60 = vsel %vm683_vm4, %v679_v46, %v691_v51  ;;  %v926_v46 = vmul.f32 %v2467_v45, %v2467_v45  ;;  %v941_v47 = vsel %vm940_vm13, %v922_v43, 0.0 }
 0x12a   : > { %v680_v61 = vadd.f32 %v676_v54, %v672_v57  ;;  %v694_v62 = vsel %vm682_vm5, %v678_v48, %v690_v55  ;;  %v942_v48 = vsel %vm940_vm13, %v924_v44, 0.0  ;;  %v928_v51 = vmul.f32 %v2476_v49, %v2476_v49  ;;  %v2492_v57 = vld [vmem:[%s2732_s12 + $0x50] sm:$0xff]  ;;  %v2589_v44 = vld [vmem:[%s2732_s12 + $0x88] sm:$0xf] }
 0x12b   : > { %vm685_vm6 = vcmp.ge.f32.partialorder %v681_v58, 0.0  ;;  %v693_v63 = vmul.f32 %v689_v56, %v681_v58  ;;  %v2182_v0 = vpack.c.bf16 %v695_v60, %v694_v62  ;;  %v943_v50 = vadd.f32 %v942_v48, %v941_v47 }
 0x12c   : > { %vm684_vm7 = vcmp.ge.f32.partialorder %v680_v61, 0.0  ;;  %v692_v1 = vmul.f32 %v688_v59, %v680_v61  ;;  %v944_v52 = vsel %vm940_vm13, %v926_v46, 0.0  ;;  %v930_v55 = vmul.f32 %v2484_v53, %v2484_v53 }
 0x12d   : > { %2183 = vmatprep.subr.bf16.mxu1 %v2182_v0  ;;  %v697_v2 = vsel %vm685_vm6, %v681_v58, %v693_v63  ;;  %v945_v54 = vadd.f32 %v944_v52, %v943_v50  ;;  %v946_v56 = vsel %vm940_vm13, %v928_v51, 0.0  ;;  %v932_v59 = vmul.f32 %v2492_v57, %v2492_v57  ;;  %v902_v51 = vld [vmem:[%s2731_s11] sm:$0xff] }
 0x12e   : > { %2185 = vmatpush3.bf16.msra.mxu1 %v2182_v0  ;;  %v696_v3 = vsel %vm684_vm7, %v680_v61, %v692_v1  ;;  %v948_v60 = vsel %vm940_vm13, %v930_v55, 0.0  ;;  %v2500_v61 = vld [vmem:[%s2732_s12 + $0x60] sm:$0xff]  ;;  %v2508_v1 = vld [vmem:[%s2732_s12 + $0x70] sm:$0xff]  ;;  %v939_v47 = vmul.f32 %v2589_v44, %v2589_v44 }
 0x12f   : > { %v2186_v4 = vpack.c.bf16 %v697_v2, %v696_v3  ;;  %v947_v58 = vadd.f32 %v946_v56, %v945_v54  ;;  %v934_v63 = vmul.f32 %v2500_v61, %v2500_v61  ;;  %v950_v0 = vsel %vm940_vm13, %v932_v59, 0.0 }
 0x130   : > { %v936_v3 = vmul.f32 %v2508_v1, %v2508_v1  ;;  %v974_v56 = vsel %vm958_vm14, %v939_v47, 0.0 }
 0x131   : > { %2187 = vmatprep.subr.bf16.mxu1 %v2186_v4  ;;  %v949_v62 = vadd.f32 %v948_v60, %v947_v58 }
 0x132   : > { %2189 = vmatpush3.bf16.msra.mxu1 %v2186_v4  ;;  %v952_v4 = vsel %vm940_vm13, %v934_v63, 0.0  ;;  %v2075_v63 = vld [vmem:[%s2604_s25 + $0x28] sm:$0xff] }
 0x133   : > { %2190 = vmatprep.subr.bf16.mxu1 %v2261_v8  ;;  %v951_v2 = vadd.f32 %v950_v0, %v949_v62  ;;  %v2069_v62 = vld [vmem:[%s2604_s25 + $0x18] sm:$0xff]  ;;  %v2068_v0 = vld [vmem:[%s2604_s25 + $0x10] sm:$0xff] }
 0x135   : > { %2153 = vmatmul.mubr.msk.f32.vlgmr.msra.gmra.mrb[4].mxu1 %vm572_vm0, %v699_v5  ;;  %v2264_v5 = vmov 0  }
 0x136   : > { %2155 = vmatprep.mubr.msk.f32.mxu1 %vm572_vm0, %v700_v6  ;;  %2243 = vset.pattern.permute.xlu0 %v2264_v5  ;;  %v2516_v6 = vld [vmem:[%s2732_s12 + $0x80] sm:$0xff] }
 0x137   : > { %2244 = vset.pattern.permute.xlu1 %v2264_v5 }
 0x139   : > { %2156 = vmatmul.mubr.msk.f32.gmra.mrb[6].mxu1 %vm572_vm0, %v701_v7  ;;  %v953_v7 = vadd.f32 %v952_v4, %v951_v2  ;;  %v2074_v2 = vld [vmem:[%s2604_s25 + $0x20] sm:$0xff]  ;;  %v1067_v4 = vld [vmem:[%s2604_s25 + $0x8] sm:$0xff] }
 0x13a   : > { %2166 = vmatprep.mubr.msk.f32.mxu1 %vm2262_vm8, %v2263_v9 }
 0x208   : > { %v2154_v10 = vpop.f32.mrb[4].mxu1 }
 0x209   : > { %v800_v12 = vmul.f32 0.17677669, %v2154_v10  ;;  %v780_v13 = vpop.f32.mrb[5].mxu1  ;;  %v954_v10 = vsel %vm940_vm13, %v936_v3, 0.0 }
 0x20a   : > { %v799_v16 = vmul.f32 0.17677669, %v780_v13 }
 0x20b   : > { %v808_v17 = vadd.f32 %v804_v11, %v800_v12  ;;  %v955_v11 = vadd.f32 %v954_v10, %v953_v7 }
 0x20c   : > { %v807_v19 = vadd.f32 %v803_v14, %v799_v16  ;;  %v2157_v20 = vpop.f32.mrb[6].mxu1  ;;  %v2526_v14 = vld [vmem:[%s2732_s12 + $0x8] sm:$0xf] }
 0x20d   : > { %vm812_vm9 = vcmp.ge.f32.partialorder %v808_v17, 0.0  ;;  %v820_v22 = vmul.f32 %v816_v15, %v808_v17  ;;  %v802_v23 = vmul.f32 0.17677669, %v2157_v20  ;;  %v790_v24 = vpop.f32.mrb[7].mxu1  ;;  %v2531_v15 = vld [vmem:[%s2732_s12 + $0x18] sm:$0xf]  ;;  %v923_v16 = vmul.f32 %v2526_v14, %v2526_v14 }
 0x20e   : > { %vm811_vm10 = vcmp.ge.f32.partialorder %v807_v19, 0.0  ;;  %v819_v26 = vmul.f32 %v815_v18, %v807_v19  ;;  %v801_v28 = vmul.f32 0.17677669, %v790_v24  ;;  %v2540_v18 = vld [vmem:[%s2732_s12 + $0x28] sm:$0xf] }
 0x20f   : > { %v824_v29 = vsel %vm812_vm9, %v808_v17, %v820_v22  ;;  %v810_v30 = vadd.f32 %v806_v21, %v802_v23  ;;  %v925_v17 = vmul.f32 %v2531_v15, %v2531_v15  ;;  %v959_v20 = vsel %vm958_vm14, %v923_v16, 0.0  ;;  %v2549_v22 = vld [vmem:[%s2732_s12 + $0x38] sm:$0xf] }
 0x210   : > { %v823_v32 = vsel %vm811_vm10, %v807_v19, %v819_v26  ;;  %v809_v33 = vadd.f32 %v805_v25, %v801_v28  ;;  %v927_v19 = vmul.f32 %v2540_v18, %v2540_v18  ;;  %v929_v24 = vmul.f32 %v2549_v22, %v2549_v22  ;;  %v2557_v26 = vld [vmem:[%s2732_s12 + $0x48] sm:$0xf] }
 0x211   : > { %vm814_vm11 = vcmp.ge.f32.partialorder %v810_v30, 0.0  ;;  %v822_v34 = vmul.f32 %v818_v27, %v810_v30  ;;  %v2191_v35 = vpack.c.bf16 %v824_v29, %v823_v32  ;;  %v960_v21 = vsel %vm958_vm14, %v925_v17, 0.0  ;;  %v2083_v17 = vld [vmem:[%s2604_s25 + $0x48] sm:$0xff] }
 0x212   : > { %vm813_vm12 = vcmp.ge.f32.partialorder %v809_v33, 0.0  ;;  %v821_v36 = vmul.f32 %v817_v31, %v809_v33  ;;  %v961_v23 = vadd.f32 %v960_v21, %v959_v20  ;;  %v962_v25 = vsel %vm958_vm14, %v927_v19, 0.0 }
 0x213   : > { %v826_v37 = vsel %vm814_vm11, %v810_v30, %v822_v34  ;;  %2192 = vmatpush3.bf16.msra.mxu1 %v2191_v35  ;;  %v931_v28 = vmul.f32 %v2557_v26, %v2557_v26  ;;  %v964_v29 = vsel %vm958_vm14, %v929_v24, 0.0  ;;  %v2565_v30 = vld [vmem:[%s2732_s12 + $0x58] sm:$0xf]  ;;  %v2573_v34 = vld [vmem:[%s2732_s12 + $0x68] sm:$0xf] }
 0x214   : > { %v825_v38 = vsel %vm813_vm12, %v809_v33, %v821_v36  ;;  %2193 = vmatprep.subr.bf16.mxu1 %v2261_v8  ;;  %v938_v8 = vmul.f32 %v2516_v6, %v2516_v6  ;;  %v963_v27 = vadd.f32 %v962_v25, %v961_v23  ;;  %v933_v32 = vmul.f32 %v2565_v30, %v2565_v30 }
 0x215   : > { %v2194_v39 = vpack.c.bf16 %v826_v37, %v825_v38  ;;  %v966_v33 = vsel %vm958_vm14, %v931_v28, 0.0  ;;  %v935_v36 = vmul.f32 %v2573_v34, %v2573_v34  ;;  %v2581_v38 = vld [vmem:[%s2732_s12 + $0x78] sm:$0xf] }
 0x216   : > { %v956_v12 = vsel %vm940_vm13, %v938_v8, 0.0  ;;  %v965_v31 = vadd.f32 %v964_v29, %v963_v27  ;;  %v968_v37 = vsel %vm958_vm14, %v933_v32, 0.0 }
 0x217   : > { %2195 = vmatpush3.bf16.msra.mxu1 %v2194_v39  ;;  %v957_v13 = vadd.f32 %v956_v12, %v955_v11  ;;  %v970_v43 = vsel %vm958_vm14, %v935_v36, 0.0  ;;  %v2079_v11 = vld [vmem:[%s2604_s25 + $0x38] sm:$0xff]  ;;  %v1066_v12 = vld [vmem:[%s2604_s25] sm:$0xff] }
 0x218   : > { %v967_v35 = vadd.f32 %v966_v33, %v965_v31  ;;  %v2098_v31 = vld [vmem:[%s2604_s25 + $0x80] sm:$0xff] }
 0x21a   : > { %2167 = vmatmul.mubr.msk.f32.vlgmr.msra.gmra.mrb[8].mxu1 %vm572_vm0, %v827_v40  ;;  %v969_v39 = vadd.f32 %v968_v37, %v967_v35  ;;  %v937_v40 = vmul.f32 %v2581_v38, %v2581_v38 }
 0x21b   : > { %2171 = vmatprep.mubr.msk.f32.mxu1 %vm940_vm13, %v957_v13  ;;  %v2078_v13 = vld [vmem:[%s2604_s25 + $0x30] sm:$0xff] }
 0x21c   : > { %v971_v46 = vadd.f32 %v970_v43, %v969_v39  ;;  %v972_v48 = vsel %vm958_vm14, %v937_v40, 0.0  ;;  %v1943_v40 = vld [vmem:[%s2734_s14] sm:$0xff]  ;;  %v1944_v43 = vld [vmem:[%s2734_s14 + $0x8] sm:$0xf] }
 0x21e   : > { %v973_v55 = vadd.f32 %v972_v48, %v971_v46 }
 0x220   : > { %v975_v60 = vadd.f32 %v974_v56, %v973_v55 }
 0x2ed   : > { %v897_v50 = vpop.f32.mrb[8].mxu1 }
 0x2ee   : > { %v901_v52 = vmul.f32 0.17677669, %v897_v50  ;;  %v2168_v54 = vpop.f32.mrb[9].mxu1  ;;  %v1909_v50 = vlaneseq }
 0x2ef   : > { %v1906_v54 = vstv %s1904_s19 }
 0x2f0   : > { %v903_v58 = vadd.f32 %v902_v51, %v901_v52  ;;  %v1910_v51 = vshrl.u32 %v1909_v50, 7 }
 0x2f2   : > { %1070 = vperm.xlu0 %2243, %v903_v58   ;;  %v976_v59 = vmul.f32 %v903_v58, %v903_v58  ;;  %v1911_v58 = vsub.s32 0, %v1910_v51 }
 0x2f4   : > { %2169 = vmatprep.subr.mxu1 %v976_v59 }
 0x2f5   : > { %2170 = vmatpush3.msra.mxu1 %v976_v59  ;;  %v1915_v59 = vsub.s32 1, %v1910_v51 }
 0x2f6   : > { %2172 = vmatmul.mubr.msk.f32.vlgmr.msra.gmra.mrb[10].mxu1 %vm940_vm13, %v975_v60 }
 0x2f7   : > { %1150 = vmatprep.mubr.f32.mxu1 %v2263_v9 }
 0x371   : > { %v2610_v3 = vpop.permute.xlu0 %1070 }
 0x372   : > { %v1079_v5 = vmul.f32 %v2069_v62, %v2610_v3  ;;  %v1250_v7 = vmul.f32 %v2075_v63, %v2610_v3  ;;  %v1078_v8 = vmul.f32 %v2068_v0, %v2610_v3  ;;  %v1249_v10 = vmul.f32 %v2074_v2, %v2610_v3 }
 0x373   : > { %v1074_v16 = vmul.f32 %v2610_v3, %v1067_v4  ;;  %v1342_v19 = vmul.f32 %v2079_v11, %v2610_v3  ;;  %v1073_v20 = vmul.f32 %v2610_v3, %v1066_v12  ;;  %v1341_v21 = vmul.f32 %v2078_v13, %v2610_v3 }
 0x374   : > { %1086 = vmatprep.subr.mxu1 %v1079_v5  ;;  %1257 = vmatprep.subr.mxu0 %v1250_v7  ;;  %v1434_v23 = vmul.f32 %v2083_v17, %v2610_v3 }
 0x375   : > { %1087 = vmatpush1.msra.mxu1 %v1078_v8  ;;  %1258 = vmatpush1.msra.mxu0 %v1249_v10 }
 0x376   : > { %2070 = vmatmul.mubr.msk.f32.vlgmr.msra.gmra.mrb[12].mxu1 %vm940_vm13, %v2458_v42  ;;  %1169 = vmatprep.subr.mxu1 %v1074_v16  ;;  %v2082_v42 = vld [vmem:[%s2604_s25 + $0x40] sm:$0xff] }
 0x377   : > { %2076 = vmatmul.mubr.msk.f32.vlgmr.msra.gmra.mrb[0].mxu0 %vm940_vm13, %v2467_v45  ;;  %1349 = vmatprep.subr.mxu0 %v1342_v19  ;;  %v2087_v45 = vld [vmem:[%s2604_s25 + $0x58] sm:$0xff]  ;;  %v1433_v24 = vmul.f32 %v2082_v42, %v2610_v3 }
 0x378   : > { %1170 = vmatpush1.msra.mxu1 %v1073_v20  ;;  %1350 = vmatpush1.msra.mxu0 %v1341_v21  ;;  %v1526_v25 = vmul.f32 %v2087_v45, %v2610_v3 }
 0x379   : > { %2196 = vmatprep.subr.mxu1 %v1250_v7  ;;  %1441 = vmatprep.subr.mxu0 %v1434_v23 }
 0x37a   : > { %1156 = vmatprep.mubr.f32.mxu1 %v2263_v9  ;;  %1413 = vmatprep.mubr.f32.mxu0 %v2263_v9 }
 0x37b   : > { %2071 = vmatmul.mubr.msk.f32.gmra.mrb[14].mxu1 %vm940_vm13, %v2531_v15  ;;  %v2086_v15 = vld [vmem:[%s2604_s25 + $0x50] sm:$0xff] }
 0x37c   : > { %1233 = vmatprep.mubr.f32.mxu1 %v2263_v9 }
 0x37f   : > { %2072 = vmatmul.mubr.msk.f32.vlgmr.msra.gmra.mrb[12].mxu1 %vm940_vm13, %v2453_v41  ;;  %2080 = vmatmul.mubr.msk.f32.vlgmr.msra.gmra.mrb[0].mxu0 %vm940_vm13, %v2476_v49  ;;  %v2091_v41 = vld [vmem:[%s2604_s25 + $0x68] sm:$0xff]  ;;  %v1525_v49 = vmul.f32 %v2086_v15, %v2610_v3 }
 0x380   : > { %2197 = vmatpush1.msra.mxu1 %v1249_v10  ;;  %1442 = vmatpush1.msra.mxu0 %v1433_v24  ;;  %v1618_v27 = vmul.f32 %v2091_v41, %v2610_v3 }
 0x381   : > { %1533 = vmatprep.subr.mxu0 %v1526_v25  ;;  %1419 = vmatprep.mubr.f32.mxu0 %v2263_v9 }
 0x382   : > { %1239 = vmatprep.mubr.f32.mxu1 %v2263_v9 }
 0x383   : > { %2081 = vmatmul.mubr.msk.f32.gmra.mrb[2].mxu0 %vm940_vm13, %v2549_v22  ;;  %2073 = vmatmul.mubr.msk.f32.gmra.mrb[14].mxu1 %vm940_vm13, %v2526_v14  ;;  %v2090_v14 = vld [vmem:[%s2604_s25 + $0x60] sm:$0xff]  ;;  %v2095_v22 = vld [vmem:[%s2604_s25 + $0x78] sm:$0xff] }
 0x384   : > { %1505 = vmatprep.mubr.f32.mxu0 %v2263_v9  ;;  %1327 = vmatprep.mubr.f32.mxu1 %v2263_v9  ;;  %v1710_v28 = vmul.f32 %v2095_v22, %v2610_v3 }
 0x387   : > { %2084 = vmatmul.mubr.msk.f32.vlgmr.msra.gmra.mrb[0].mxu0 %vm940_vm13, %v2484_v53  ;;  %v1617_v53 = vmul.f32 %v2090_v14, %v2610_v3 }
 0x388   : > { %1534 = vmatpush1.msra.mxu0 %v1525_v49  ;;  %1511 = vmatprep.mubr.f32.mxu0 %v2263_v9 }
 0x389   : > { %1625 = vmatprep.subr.mxu0 %v1618_v27 }
 0x38b   : > { %2085 = vmatmul.mubr.msk.f32.gmra.mrb[2].mxu0 %vm940_vm13, %v2557_v26  ;;  %2077 = vmatmul.mubr.msk.f32.vlgmr.msra.gmra.mrb[14].mxu1 %vm940_vm13, %v2540_v18  ;;  %v2094_v26 = vld [vmem:[%s2604_s25 + $0x70] sm:$0xff]  ;;  %v2099_v18 = vld [vmem:[%s2604_s25 + $0x88] sm:$0xff]  ;;  %s527_s25 = scalar_lea.vmem %s2723_s3, %s2054_s22 }
 0x38c   : > { %1597 = vmatprep.mubr.f32.mxu0 %v2263_v9  ;;  %v1709_v29 = vmul.f32 %v2094_v26, %v2610_v3  ;;  %v1905_v52 = vld [vmem:[%s527_s25] sm:$0x3] }
 0x38d   : > { %v1907_v56 = vmul.f32 %v1906_v54, %v1905_v52 }
 0x38f   : > { %2088 = vmatmul.mubr.msk.f32.vlgmr.msra.gmra.mrb[0].mxu0 %vm940_vm13, %v2492_v57  ;;  %v1802_v57 = vmul.f32 %v2099_v18, %v2610_v3  ;;  %v1912_v2 = vrot.slane %v1907_v56, %v1911_v58  ;;  %v1916_v4 = vrot.slane %v1907_v56, %v1915_v59 }
 0x390   : > { %1626 = vmatpush1.msra.mxu0 %v1617_v53  ;;  %1603 = vmatprep.mubr.f32.mxu0 %v2263_v9 }
 0x391   : > { %1717 = vmatprep.subr.mxu0 %v1710_v28 }
 0x393   : > { %2089 = vmatmul.mubr.msk.f32.gmra.mrb[2].mxu0 %vm940_vm13, %v2565_v30  ;;  %v1801_v30 = vmul.f32 %v2098_v31, %v2610_v3 }
 0x394   : > { %1689 = vmatprep.mubr.f32.mxu0 %v2263_v9 }
 0x397   : > { %2092 = vmatmul.mubr.msk.f32.vlgmr.msra.gmra.mrb[0].mxu0 %vm940_vm13, %v2500_v61 }
 0x398   : > { %1718 = vmatpush1.msra.mxu0 %v1709_v29  ;;  %1695 = vmatprep.mubr.f32.mxu0 %v2263_v9 }
 0x399   : > { %1809 = vmatprep.subr.mxu0 %v1802_v57 }
 0x39b   : > { %2093 = vmatmul.mubr.msk.f32.gmra.mrb[2].mxu0 %vm940_vm13, %v2573_v34 }
 0x39c   : > { %1781 = vmatprep.mubr.f32.mxu0 %v2263_v9 }
 0x39f   : > { %2096 = vmatmul.mubr.msk.f32.vlgmr.msra.gmra.mrb[0].mxu0 %vm940_vm13, %v2508_v1 }
 0x3a0   : > { %1810 = vmatpush1.msra.mxu0 %v1801_v30  ;;  %1787 = vmatprep.mubr.f32.mxu0 %v2263_v9 }
 0x3a3   : > { %2097 = vmatmul.mubr.msk.f32.gmra.mrb[2].mxu0 %vm940_vm13, %v2581_v38 }
 0x3a4   : > { %1873 = vmatprep.mubr.f32.mxu0 %v2263_v9 }
 0x3a7   : > { %2100 = vmatmul.mubr.msk.f32.vlgmr.msra.gmra.mrb[0].mxu0 %vm940_vm13, %v2516_v6  ;;  %v1924_v6 = vld [vmem:[%s2733_s13 + $0x8] sm:$0xf] }
 0x3a8   : > { %1879 = vmatprep.mubr.f32.mxu0 %v2263_v9  ;;  %v1923_v9 = vld [vmem:[%s2733_s13] sm:$0xff] }
 0x3ab   : > { %2101 = vmatmul.mubr.msk.f32.gmra.mrb[2].mxu0 %vm940_vm13, %v2589_v44 }
 0x3c9   : > { %v2173_v61 = vpop.f32.mrb[10].mxu1 }
 0x3ca   : > { %v1059_v32 = vmul.f32 0.013888889, %v2173_v61  ;;  %v1049_v33 = vpop.f32.mrb[11].mxu1 }
 0x3cb   : > { %v1058_v1 = vmul.f32 0.013888889, %v1049_v33 }
 0x3cc   : > { %v1061_v34 = vadd.f32 1e-08, %v1059_v32 }
 0x3cd   : > { %v1060_v35 = vadd.f32 1e-08, %v1058_v1 }
 0x3ce   : > { %2249 = vrsqrt.f32 %v1061_v34 }
 0x3cf   : > { %2251 = vrsqrt.f32 %v1060_v35 }
 0x3d8   : > { %v2250_v36 = vpop.eup %2249 }
 0x3d9   : > { %v2252_v37 = vpop.eup %2251  ;;  %v1065_v38 = vmul.f32 0.11785113, %v2250_v36 }
 0x3da   : > { %v1064_v39 = vmul.f32 0.11785113, %v2252_v37 }
 0x3db   : > { %1897 = vperm.xlu1 %2244, %v1065_v38  }
 0x3dc   : > { %1892 = vperm.xlu0 %2243, %v1064_v39  }
 0x3df   : > { %1927 = vperm.xlu1 %2244, %v1923_v9  }
 0x3e0   : > { %1932 = vperm.xlu0 %2243, %v1924_v6  }
 0x3e3   : > { %1947 = vperm.xlu1 %2244, %v1943_v40  }
 0x3e4   : > { %1952 = vperm.xlu0 %2243, %v1944_v43  }
 0x452   : > { %v1235_v44 = vpop.f32.mrb[12].mxu1 }
 0x453   : > { %v1237_v46 = vpop.f32.mrb[13].mxu1 }
 0x45a   : > { %v1898_v55 = vpop.permute.xlu1 %1897 }
 0x45b   : > { %v1893_v60 = vpop.permute.xlu0 %1892 }
 0x45e   : > { %v1329_v47 = vpop.f32.mrb[14].mxu1  ;;  %v1928_v5 = vpop.permute.xlu1 %1927 }
 0x45f   : > { %v1331_v48 = vpop.f32.mrb[15].mxu1  ;;  %v1933_v16 = vpop.permute.xlu0 %1932 }
 0x462   : > { %v1948_v45 = vpop.permute.xlu1 %1947 }
 0x463   : > { %v1953_v14 = vpop.permute.xlu0 %1952 }
 0x47a   : > { %v1875_v62 = vpop.f32.mrb[0].mxu0 }
 0x47b   : > { %v2198_v63 = vadd.f32 %v1875_v62, %v1235_v44  ;;  %v1877_v0 = vpop.f32.mrb[1].mxu0 }
 0x47c   : > { %v2199_v3 = vadd.f32 %v1877_v0, %v1237_v46 }
 0x47d   : > { %v1900_v7 = vmul.f32 %v2198_v63, %v1893_v60 }
 0x47e   : > { %v1901_v8 = vmul.f32 %v2199_v3, %v1893_v60  ;;  %v1881_v10 = vpop.f32.mrb[2].mxu0 }
 0x47f   : > { %v1919_v11 = vadd.f32 %v1912_v2, %v1900_v7  ;;  %v2200_v12 = vadd.f32 %v1881_v10, %v1329_v47  ;;  %v1883_v13 = vpop.f32.mrb[3].mxu0 }
 0x480   : > { %v1920_v17 = vadd.f32 %v1916_v4, %v1901_v8  ;;  %v2201_v19 = vadd.f32 %v1883_v13, %v1331_v48 }
 0x481   : > { %v1935_v20 = vadd.f32 %v1928_v5, %v1919_v11  ;;  %v1902_v21 = vmul.f32 %v2200_v12, %v1898_v55 }
 0x482   : > { %v1936_v23 = vadd.f32 %v1928_v5, %v1920_v17  ;;  %v1903_v42 = vmul.f32 %v2201_v19, %v1898_v55 }
 0x483   : > { %vm1939_vm15 = vcmp.ge.f32.partialorder %v1935_v20, 0.0  ;;  %v1921_v24 = vadd.f32 %v1912_v2, %v1902_v21  ;;  %v1955_v25 = vmul.f32 %v1948_v45, %v1935_v20 }
 0x484   : > { %vm1940_vm0 = vcmp.ge.f32.partialorder %v1936_v23, 0.0  ;;  %v1922_v15 = vadd.f32 %v1916_v4, %v1903_v42  ;;  %v1956_v41 = vmul.f32 %v1948_v45, %v1936_v23 }
 0x485   : > { %v1937_v49 = vadd.f32 %v1933_v16, %v1921_v24  ;;  %v1959_v27 = vsel %vm1939_vm15, %v1935_v20, %v1955_v25 }
 0x486   : > { %v1938_v22 = vadd.f32 %v1933_v16, %v1922_v15  ;;  %v1960_v53 = vsel %vm1940_vm0, %v1936_v23, %v1956_v41  ;;  %1963 = vst [vmem:[%s532_s28] sm:$0xff] %v1959_v27 }
 0x487   : > { %vm1941_vm1 = vcmp.ge.f32.partialorder %v1937_v49, 0.0  ;;  %v1957_v28 = vmul.f32 %v1953_v14, %v1937_v49  ;;  %1964 = vst [vmem:[%s532_s28 + $0x8] sm:$0xff] %v1960_v53 }
 0x488   : > { %vm1942_vm2 = vcmp.ge.f32.partialorder %v1938_v22, 0.0  ;;  %v1958_v26 = vmul.f32 %v1953_v14, %v1938_v22 }
 0x489   : > { %v1961_v18 = vsel %vm1941_vm1, %v1937_v49, %v1957_v28 }
 0x48a   : > { %v1962_v29 = vsel %vm1942_vm2, %v1938_v22, %v1958_v26  ;;  %1965 = vst [vmem:[%s532_s28 + $0x10] sm:$0xf] %v1961_v18 }
 0x48b   : > { %1966 = vst [vmem:[%s532_s28 + $0x18] sm:$0xf] %v1962_v29 }
 0x48c PF: > { %s26_s20 = sadd.s32 1, %s2259_s20  }
 0x48d   : > { %p23_p4 = scmp.ge.s32.totalorder %s26_s20, 4  }
 0x48f   :  { %25 = sbr.rel (!%p23_p4) target bundleno = 2 (0x2), region = 124 }

</bundles_post_ra>
